<compile_context>
chip_gen: v7x
topology: tpu7x:2x2x1
jax: 0.10.0
libtpu: 0.0.40
codegen_flags: <defaults>
</compile_context>

<pallas_src>
import functools

import jax
import jax.numpy as jnp
import numpy as np
from jax.experimental import pallas as pl
from jax.experimental.pallas import tpu as pltpu

EPS = 1e-5
LANES = 128
NCORES = 2          # split the stats grid over 2 TCs (v7x); harmless on 1-TC chips


def _round_up(x, m):
    return (x + m - 1) // m * m


def _vmem_limit_bytes():
    """Scoped-VMEM request derived from the physical VMEM of this chip."""
    phys = 128 * 1024 * 1024
    try:
        info = pltpu.get_tpu_info()
        for name in ("vmem_capacity_bytes", "vmem_bytes", "vmem_size_bytes"):
            v = getattr(info, name, None)
            if v:
                phys = int(v)
                break
    except Exception:
        pass
    return max(16 * 1024 * 1024, min(64 * 1024 * 1024, phys // 2))


def _pick_tile_m(m, k_max, cp_max, vmem_limit):
    """Largest row tile whose double-buffered working set fits the VMEM budget."""
    budget = (3 * vmem_limit) // 4
    fixed = 2 * (k_max * cp_max * 2) + 8 * cp_max * 4 + (1 << 16)   # weights + vectors
    per_row = 2 * 2 * k_max + 2 * 2 * cp_max    # dbuf bf16 patches + dbuf bf16 y
    cap = (budget - fixed) // max(per_row, 1)
    per_core = -(-m // NCORES)
    t = min(1024, max(cap, 16))
    t = max(16, (t // 16) * 16)                 # multiple of 16: bf16 sublane tile
    if per_core < t:
        t = _round_up(per_core, 16)
    return t


# ----------------------------- Pallas kernels ------------------------------

def _mm_stats_body(a_bf16, w_ref, y_ref, sum_ref, sq_ref):
    """MXU matmul (f32 accumulate), bf16 store, per-core BN partial sums."""
    y = jnp.dot(a_bf16, w_ref[...], preferred_element_type=jnp.float32)
    y_ref[...] = y.astype(y_ref.dtype)

    @pl.when(pl.program_id(1) == 0)
    def _init():
        sum_ref[...] = jnp.zeros_like(sum_ref)
        sq_ref[...] = jnp.zeros_like(sq_ref)

    # (1, cp) broadcasts into the (8, cp) partial block (all sublanes identical).
    sum_ref[...] += jnp.sum(y, axis=0, keepdims=True)
    sq_ref[...] += jnp.sum(y * y, axis=0, keepdims=True)


def _matmul_stats_kernel(p_ref, w_ref, y_ref, sum_ref, sq_ref):
    _mm_stats_body(p_ref[...], w_ref, y_ref, sum_ref, sq_ref)


def _matmul_stats_prescale_kernel(p_ref, w_ref, s_ref, y_ref, sum_ref, sq_ref):
    # Folded bn1 + ReLU: patches hold z = y1 + shift/scale, so
    # relu(scale * z) == relu(scale * y1 + shift) and zero padding stays 0.
    a = jnp.maximum(p_ref[...].astype(jnp.float32) * s_ref[...], 0.0)
    _mm_stats_body(a.astype(jnp.bfloat16), w_ref, y_ref, sum_ref, sq_ref)


def _bn_add_relu_kernel(y_ref, r_ref, sc_ref, sh_ref, scr_ref, shr_ref, o_ref):
    """bn2 apply + residual-branch BN apply + add + final ReLU."""
    v = y_ref[...].astype(jnp.float32) * sc_ref[...] + sh_ref[...]
    r = r_ref[...].astype(jnp.float32) * scr_ref[...] + shr_ref[...]
    o_ref[...] = jnp.maximum(v + r, 0.0)


# ------------------------- pallas_call wrappers -----------------------------

def matmul_stats(patches, w, *, prescale=None, tile_m, tpc, vmem_limit):
    """patches (Mp,K) bf16 @ w (K,Cp) bf16 -> y (Mp,Cp) bf16 + per-core BN sums."""
    m_pad, k = patches.shape
    cp = w.shape[1]
    row_map = lambda c, j: (c * tpc + j, 0)
    res_map = lambda c, j: (0, 0)
    part_map = lambda c, j: (c, 0)

    in_specs = [pl.BlockSpec((tile_m, k), row_map),     # patch tile (streamed)
                pl.BlockSpec((k, cp), res_map)]         # weight, VMEM-resident
    operands = [patches, w]
    if prescale is not None:
        in_specs.append(pl.BlockSpec((1, k), res_map))  # tiled bn1 scale
        operands.append(prescale)
        kernel = _matmul_stats_prescale_kernel
    else:
        kernel = _matmul_stats_kernel

    return pl.pallas_call(
        kernel,
        grid=(NCORES, tpc),
        in_specs=in_specs,
        out_specs=(
            pl.BlockSpec((tile_m, cp), row_map),        # bf16 pre-BN conv output
            pl.BlockSpec((8, cp), part_map),            # per-core sum partial
            pl.BlockSpec((8, cp), part_map),            # per-core sum-of-squares
        ),
        out_shape=(
            jax.ShapeDtypeStruct((m_pad, cp), jnp.bfloat16),
            jax.ShapeDtypeStruct((NCORES * 8, cp), jnp.float32),
            jax.ShapeDtypeStruct((NCORES * 8, cp), jnp.float32),
        ),
        compiler_params=pltpu.CompilerParams(
            dimension_semantics=("parallel", "arbitrary"),
            vmem_limit_bytes=vmem_limit),
    )(*operands)


def bn_add_relu(y2, res, sc2, sh2, scr, shr, *, tile_m, vmem_limit):
    m_pad, cp = y2.shape
    row = lambda i: (i, 0)
    resident = lambda i: (0, 0)
    return pl.pallas_call(
        _bn_add_relu_kernel,
        grid=(m_pad // tile_m,),
        in_specs=[
            pl.BlockSpec((tile_m, cp), row),    # conv2 pre-BN output (bf16)
            pl.BlockSpec((tile_m, cp), row),    # residual source (bf16; may be wider array)
            pl.BlockSpec((1, cp), resident),    # bn2 scale
            pl.BlockSpec((1, cp), resident),    # bn2 shift
            pl.BlockSpec((1, cp), resident),    # residual-branch scale
            pl.BlockSpec((1, cp), resident),    # residual-branch shift
        ],
        out_specs=pl.BlockSpec((tile_m, cp), row),
        out_shape=jax.ShapeDtypeStruct((m_pad, cp), jnp.float32),
        compiler_params=pltpu.CompilerParams(
            dimension_semantics=("parallel",),
            vmem_limit_bytes=vmem_limit),
    )(y2, res, sc2, sh2, scr, shr)


# ------------------------------- glue (JAX) --------------------------------

def _im2col(x_nhwc, k, stride, pad):
    n, h, w, c = x_nhwc.shape
    xp = jnp.pad(x_nhwc, ((0, 0), (pad, pad), (pad, pad), (0, 0)))
    ho = (h + 2 * pad - k) // stride + 1
    wo = (w + 2 * pad - k) // stride + 1
    cols = []
    for dy in range(k):
        for dx in range(k):
            cols.append(
                xp[:, dy:dy + stride * ho:stride, dx:dx + stride * wo:stride, :])
    patches = jnp.concatenate(cols, axis=-1)            # (n, ho, wo, k*k*c)
    return patches.reshape(n * ho * wo, k * k * c), ho, wo


def _w_to_mat(w_oihw):
    # (C_out, C_in, kh, kw) -> (kh*kw*C_in, C_out), matching im2col column order
    co, ci, kh, kw = w_oihw.shape
    return jnp.transpose(w_oihw, (2, 3, 1, 0)).reshape(kh * kw * ci, co)


def _pad_cols(a, width):
    return jnp.pad(a, ((0, 0), (0, width - a.shape[1])))


def _pad_rows(a, rows):
    return jnp.pad(a, ((0, rows - a.shape[0]), (0, 0)))


def _finalize_bn(sum_p, sq_p, gamma, beta, m):
    """Reduce per-core partial sums; return training-mode BN scale/shift (f32)."""
    s = jnp.sum(sum_p[::8], axis=0)              # rows within each 8-block identical
    q = jnp.sum(sq_p[::8], axis=0)
    mean = s / m
    var = jnp.maximum(q / m - mean * mean, 0.0)  # biased (training) variance
    scale = gamma * jax.lax.rsqrt(var + EPS)
    shift = beta - mean * scale
    return scale, shift


@functools.partial(jax.jit, static_argnames=("stride", "has_downsample"))
def basic_block_forward(x_nchw, params, *, stride, has_downsample):
    x = jnp.transpose(x_nchw, (0, 2, 3, 1)).astype(jnp.float32)   # NCHW -> NHWC
    n, h, w, c_in = x.shape
    c_out = params["w1"].shape[0]
    if not has_downsample:
        assert stride == 1 and c_in == c_out, "identity residual requires stride=1, c_in=c_out"

    xb = x.astype(jnp.bfloat16)

    # --- conv1 (3x3, stride s, pad 1) [+ fused 1x1 downsample] + BN stats ----
    patches1, ho, wo = _im2col(xb, 3, stride, 1)         # (m, 9*c_in) bf16
    m = n * ho * wo
    k1, k2 = 9 * c_in, 9 * c_out

    w1_mat = _w_to_mat(params["w1"])                     # (9*c_in, c_out)
    if has_downsample:
        # Embed the 1x1 stride-s downsample weight at the centre tap (dy=dx=1)
        # of the 3x3 im2col weight.  Downsample channels go FIRST so the
        # residual lands lane-aligned with conv2's output channels.
        wd_mat = params["wd"].reshape(c_out, c_in).T     # (c_in, c_out)
        wd_embed = jnp.zeros_like(w1_mat).at[4 * c_in:5 * c_in, :].set(wd_mat)
        w_comb = jnp.concatenate([wd_embed, w1_mat], axis=1)   # (9*c_in, 2*c_out)
        gamma1 = jnp.concatenate([params["gd"], params["g1"]])
        beta1 = jnp.concatenate([params["bd"], params["b1"]])
        conv1_off = c_out
    else:
        w_comb = w1_mat
        gamma1, beta1 = params["g1"], params["b1"]
        conv1_off = 0

    cp1 = _round_up(w_comb.shape[1], LANES)
    cp2 = _round_up(c_out, LANES)
    vmem_limit = _vmem_limit_bytes()
    tile_m = _pick_tile_m(m, max(k1, k2), max(cp1, cp2), vmem_limit)
    tpc = -(-m // (NCORES * tile_m))                     # row tiles per core
    m_pad = NCORES * tpc * tile_m

    w_comb_p = _pad_cols(w_comb, cp1).astype(jnp.bfloat16)
    gamma1_p = jnp.pad(gamma1, (0, cp1 - gamma1.shape[0]))
    beta1_p = jnp.pad(beta1, (0, cp1 - beta1.shape[0]))
    p1 = _pad_rows(patches1, m_pad)

    y1_pre, s1, q1 = matmul_stats(p1, w_comb_p, tile_m=tile_m, tpc=tpc,
                                  vmem_limit=vmem_limit)
    scale1, shift1 = _finalize_bn(s1, q1, gamma1_p, beta1_p, m)   # (cp1,)

    # --------------- conv2 (3x3, stride 1, pad 1) + folded bn1+ReLU ----------
    sc1c = scale1[conv1_off:conv1_off + c_out]
    sh1c = shift1[conv1_off:conv1_off + c_out]
    safe = jnp.where(jnp.abs(sc1c) > 1e-12, sc1c, 1.0)
    zoff = sh1c / safe          # shift folded into the activation: relu(sc*(y+sh/sc))
    z = (y1_pre[:m, conv1_off:conv1_off + c_out].astype(jnp.float32)
         + zoff).astype(jnp.bfloat16).reshape(n, ho, wo, c_out)
    patches2, _, _ = _im2col(z, 3, 1, 1)                 # (m, 9*c_out) bf16
    p2 = _pad_rows(patches2, m_pad)
    sc1_tiled = jnp.tile(sc1c, 9).reshape(1, k2).astype(jnp.float32)

    w2_mat = _pad_cols(_w_to_mat(params["w2"]), cp2).astype(jnp.bfloat16)
    gamma2_p = jnp.pad(params["g2"], (0, cp2 - c_out))
    beta2_p = jnp.pad(params["b2"], (0, cp2 - c_out))

    y2_pre, s2, q2 = matmul_stats(p2, w2_mat, prescale=sc1_tiled,
                                  tile_m=tile_m, tpc=tpc, vmem_limit=vmem_limit)
    scale2, shift2 = _finalize_bn(s2, q2, gamma2_p, beta2_p, m)   # (cp2,)

    # ------------- residual BN + bn2 apply + add + final ReLU (fused) --------
    if has_downsample:
        # First c_out lanes of y1_pre hold the pre-BN 1x1 downsample output;
        # its BN is applied in-kernel (lanes >= c_out are zeroed by scr/shr=0).
        res = y1_pre
        scr = jnp.zeros((cp2,), jnp.float32).at[:c_out].set(scale1[:c_out])
        shr = jnp.zeros((cp2,), jnp.float32).at[:c_out].set(shift1[:c_out])
    else:
        # Identity residual at native width, one fused bf16 pad.
        res = jnp.pad(xb.reshape(m, c_in), ((0, m_pad - m), (0, cp2 - c_in)))
        scr = jnp.zeros((cp2,), jnp.float32).at[:c_out].set(1.0)
        shr = jnp.zeros((cp2,), jnp.float32)

    out = bn_add_relu(y2_pre, res,
                      scale2.reshape(1, cp2), shift2.reshape(1, cp2),
                      scr.reshape(1, cp2), shr.reshape(1, cp2),
                      tile_m=tile_m, vmem_limit=vmem_limit)

    out = out[:m, :c_out].reshape(n, ho, wo, c_out)
    return jnp.transpose(out, (0, 3, 1, 2))               # NHWC -> NCHW


# -------------------------- pure-JAX reference ------------------------------

def _conv_ref(x_nhwc, w_oihw, stride, pad):
    w = jnp.transpose(w_oihw, (2, 3, 1, 0))               # OIHW -> HWIO
    return jax.lax.conv_general_dilated(
        x_nhwc, w, (stride, stride), [(pad, pad), (pad, pad)],
        dimension_numbers=("NHWC", "HWIO", "NHWC"),
        precision=jax.lax.Precision.HIGHEST)


def _bn_ref(y, g, b):
    mean = y.mean(axis=(0, 1, 2), keepdims=True)
    var = ((y - mean) ** 2).mean(axis=(0, 1, 2), keepdims=True)
    return (y - mean) * jax.lax.rsqrt(var + EPS) * g + b


def basic_block_ref(x_nchw, p, stride, has_downsample):
    x = jnp.transpose(x_nchw, (0, 2, 3, 1)).astype(jnp.float32)
    y = _conv_ref(x, p["w1"], stride, 1)
    y = jnp.maximum(_bn_ref(y, p["g1"], p["b1"]), 0.0)
    y = _conv_ref(y, p["w2"], 1, 1)
    y = _bn_ref(y, p["g2"], p["b2"])
    if has_downsample:
        xr = _bn_ref(_conv_ref(x, p["wd"], stride, 0), p["gd"], p["bd"])
    else:
        xr = x
    out = jnp.maximum(xr + y, 0.0)
    return jnp.transpose(out, (0, 3, 1, 2))


# ---------------------------------- main ------------------------------------

def init_params(key, c_in, c_out, is_downsample):
    # mirrors BasicBlock.__init__: downsample branch also exists when c_in != c_out
    has_ds = is_downsample or (c_in != c_out)
    stride = 2 if is_downsample else 1
    ks = jax.random.split(key, 9)
    p = {
        "w1": 0.1 * jax.random.normal(ks[0], (c_out, c_in, 3, 3), jnp.float32),
        "g1": 1.0 + 0.1 * jax.random.normal(ks[1], (c_out,), jnp.float32),
        "b1": 0.1 * jax.random.normal(ks[2], (c_out,), jnp.float32),
        "w2": 0.1 * jax.random.normal(ks[3], (c_out, c_out, 3, 3), jnp.float32),
        "g2": 1.0 + 0.1 * jax.random.normal(ks[4], (c_out,), jnp.float32),
        "b2": 0.1 * jax.random.normal(ks[5], (c_out,), jnp.float32),
    }
    if has_ds:
        p["wd"] = 0.1 * jax.random.normal(ks[6], (c_out, c_in, 1, 1), jnp.float32)
        p["gd"] = 1.0 + 0.1 * jax.random.normal(ks[7], (c_out,), jnp.float32)
        p["bd"] = 0.1 * jax.random.normal(ks[8], (c_out,), jnp.float32)
    return p, stride, has_ds


def _run_case(key, n, c_in, h, w, c_out, is_downsample):
    kx, kp = jax.random.split(key)
    x = jax.random.normal(kx, (n, c_in, h, w), jnp.float32)   # NCHW like PyTorch
    params, stride, has_ds = init_params(kp, c_in, c_out, is_downsample)

    out = jax.block_until_ready(
        basic_block_forward(x, params, stride=stride, has_downsample=has_ds))
    ref = jax.block_until_ready(basic_block_ref(x, params, stride, has_ds))

    assert out.shape == ref.shape, (out.shape, ref.shape)
    # Tolerance covers the deliberate bf16 MXU inputs AND bf16 HBM intermediates.
    np.testing.assert_allclose(np.asarray(out), np.asarray(ref),
                               atol=6e-2, rtol=6e-2)


if __name__ == "__main__":
    key = jax.random.PRNGKey(0)
    k1, k2 = jax.random.split(key)

    # Stride-2 downsample block: fused 1x1 branch + cross-tile per-core BN stats.
    _run_case(k1, n=2, c_in=4, h=16, w=16, c_out=8, is_downsample=True)
    # Identity-residual block with odd spatial size: exercises row padding.
    _run_case(k2, n=2, c_in=8, h=10, w=10, c_out=8, is_downsample=False)

    print("KERNEL_OK")
</pallas_src>

<mosaic_0001>
module attributes {stable_mosaic.version = 11 : i64} {
  func.func @_matmul_stats_kernel(%arg0: i32, %arg1: i32, %arg2: memref<64x36xbf16, #tpu.memory_space<vmem>>, %arg3: memref<36x128xbf16, #tpu.memory_space<vmem>>, %arg4: memref<64x128xbf16, #tpu.memory_space<vmem>>, %arg5: memref<8x128xf32, #tpu.memory_space<vmem>>, %arg6: memref<8x128xf32, #tpu.memory_space<vmem>>) attributes {dimension_semantics = [#tpu.dimension_semantics<parallel>, #tpu.dimension_semantics<arbitrary>], iteration_bounds = array<i64: 2, 1>, scalar_prefetch = 0 : i64, scratch_operands = 0 : i64, tpu.core_type = #tpu.core_type<tc>, window_params = [{transform_indices = @transform_0, window_bounds = array<i64: 64, 36>}, {pipeline_mode = #tpu.pipeline_mode<synchronous>, transform_indices = @transform_1, window_bounds = array<i64: 36, 128>}, {transform_indices = @transform_2, window_bounds = array<i64: 64, 128>}, {transform_indices = @transform_3, window_bounds = array<i64: 8, 128>}, {transform_indices = @transform_4, window_bounds = array<i64: 8, 128>}]} {
    %c0 = arith.constant 0 : index
    %c0_0 = arith.constant 0 : index
    %0 = vector.load %arg2[%c0, %c0_0] : memref<64x36xbf16, #tpu.memory_space<vmem>>, vector<64x36xbf16>
    %c0_1 = arith.constant 0 : index
    %c0_2 = arith.constant 0 : index
    %1 = vector.load %arg3[%c0_1, %c0_2] : memref<36x128xbf16, #tpu.memory_space<vmem>>, vector<36x128xbf16>
    %cst = arith.constant dense<0.000000e+00> : vector<64x128xf32>
    %2 = tpu.matmul %0, %1, %cst {dimension_numbers = #tpu.dot_dimension_numbers<[1], [0], [0], [1], [0, 0, 1, 1], [], []>} : vector<64x36xbf16>, vector<36x128xbf16>, vector<64x128xf32> -> vector<64x128xf32>
    %3 = arith.truncf %2 : vector<64x128xf32> to vector<64x128xbf16>
    %c0_3 = arith.constant 0 : index
    %c0_4 = arith.constant 0 : index
    %4 = vector.load %arg4[%c0_3, %c0_4] : memref<64x128xbf16, #tpu.memory_space<vmem>>, vector<64x128xbf16>
    tpu.vector_store %arg4[%c0_3, %c0_4], %3 {strides = array<i32>} : memref<64x128xbf16, #tpu.memory_space<vmem>>, vector<64x128xbf16>,
    %c0_i32 = arith.constant 0 : i32
    %5 = arith.cmpi eq, %arg1, %c0_i32 : i32
    %6 = arith.extui %5 : i1 to i32
    %c0_i32_5 = arith.constant 0 : i32
    %7 = arith.cmpi ne, %6, %c0_i32_5 : i32
    scf.if %7 {
      %cst_16 = arith.constant 0.000000e+00 : f32
      %21 = vector.broadcast %cst_16 : f32 to vector<8x128xf32>
      %c0_17 = arith.constant 0 : index
      %c0_18 = arith.constant 0 : index
      %22 = vector.load %arg5[%c0_17, %c0_18] : memref<8x128xf32, #tpu.memory_space<vmem>>, vector<8x128xf32>
      tpu.vector_store %arg5[%c0_17, %c0_18], %21 {strides = array<i32>} : memref<8x128xf32, #tpu.memory_space<vmem>>, vector<8x128xf32>,
      %cst_19 = arith.constant 0.000000e+00 : f32
      %23 = vector.broadcast %cst_19 : f32 to vector<8x128xf32>
      %c0_20 = arith.constant 0 : index
      %c0_21 = arith.constant 0 : index
      %24 = vector.load %arg6[%c0_20, %c0_21] : memref<8x128xf32, #tpu.memory_space<vmem>>, vector<8x128xf32>
      tpu.vector_store %arg6[%c0_20, %c0_21], %23 {strides = array<i32>} : memref<8x128xf32, #tpu.memory_space<vmem>>, vector<8x128xf32>,
    } else {
    }
    %c0_6 = arith.constant 0 : index
    %c0_7 = arith.constant 0 : index
    %8 = vector.load %arg5[%c0_6, %c0_7] : memref<8x128xf32, #tpu.memory_space<vmem>>, vector<8x128xf32>
    %cst_8 = arith.constant dense<0.000000e+00> : vector<128xf32>
    %9 = vector.multi_reduction <add>, %2, %cst_8 [0] : vector<64x128xf32> to vector<128xf32>
    %10 = vector.shape_cast %9 : vector<128xf32> to vector<1x128xf32>
    %11 = vector.broadcast %10 : vector<1x128xf32> to vector<8x128xf32>
    %12 = arith.addf %8, %11 : vector<8x128xf32>
    %c0_9 = arith.constant 0 : index
    %c0_10 = arith.constant 0 : index
    %13 = vector.load %arg5[%c0_9, %c0_10] : memref<8x128xf32, #tpu.memory_space<vmem>>, vector<8x128xf32>
    tpu.vector_store %arg5[%c0_9, %c0_10], %12 {strides = array<i32>} : memref<8x128xf32, #tpu.memory_space<vmem>>, vector<8x128xf32>,
    %c0_11 = arith.constant 0 : index
    %c0_12 = arith.constant 0 : index
    %14 = vector.load %arg6[%c0_11, %c0_12] : memref<8x128xf32, #tpu.memory_space<vmem>>, vector<8x128xf32>
    %15 = arith.mulf %2, %2 : vector<64x128xf32>
    %cst_13 = arith.constant dense<0.000000e+00> : vector<128xf32>
    %16 = vector.multi_reduction <add>, %15, %cst_13 [0] : vector<64x128xf32> to vector<128xf32>
    %17 = vector.shape_cast %16 : vector<128xf32> to vector<1x128xf32>
    %18 = vector.broadcast %17 : vector<1x128xf32> to vector<8x128xf32>
    %19 = arith.addf %14, %18 : vector<8x128xf32>
    %c0_14 = arith.constant 0 : index
    %c0_15 = arith.constant 0 : index
    %20 = vector.load %arg6[%c0_14, %c0_15] : memref<8x128xf32, #tpu.memory_space<vmem>>, vector<8x128xf32>
    tpu.vector_store %arg6[%c0_14, %c0_15], %19 {strides = array<i32>} : memref<8x128xf32, #tpu.memory_space<vmem>>, vector<8x128xf32>,
    return
  }
  func.func @transform_0(%arg0: i32, %arg1: i32) -> (i32, i32) {
    %c1_i32 = arith.constant 1 : i32
    %0 = arith.muli %arg0, %c1_i32 : i32
    %1 = arith.addi %0, %arg1 : i32
    %c0_i32 = arith.constant 0 : i32
    %c0_i32_0 = arith.constant 0 : i32
    return %1, %c0_i32 : i32, i32
  }
  func.func @transform_1(%arg0: i32, %arg1: i32) -> (i32, i32) {
    %c0_i32 = arith.constant 0 : i32
    %c0_i32_0 = arith.constant 0 : i32
    %c0_i32_1 = arith.constant 0 : i32
    return %c0_i32, %c0_i32_0 : i32, i32
  }
  func.func @transform_2(%arg0: i32, %arg1: i32) -> (i32, i32) {
    %c1_i32 = arith.constant 1 : i32
    %0 = arith.muli %arg0, %c1_i32 : i32
    %1 = arith.addi %0, %arg1 : i32
    %c0_i32 = arith.constant 0 : i32
    %c0_i32_0 = arith.constant 0 : i32
    return %1, %c0_i32 : i32, i32
  }
  func.func @transform_3(%arg0: i32, %arg1: i32) -> (i32, i32) {
    %c0_i32 = arith.constant 0 : i32
    %c0_i32_0 = arith.constant 0 : i32
    return %arg0, %c0_i32 : i32, i32
  }
  func.func @transform_4(%arg0: i32, %arg1: i32) -> (i32, i32) {
    %c0_i32 = arith.constant 0 : i32
    %c0_i32_0 = arith.constant 0 : i32
    return %arg0, %c0_i32 : i32, i32
  }
}

module attributes {stable_mosaic.version = 11 : i64} {
  func.func @_matmul_stats_prescale_kernel(%arg0: i32, %arg1: i32, %arg2: memref<64x72xbf16, #tpu.memory_space<vmem>>, %arg3: memref<72x128xbf16, #tpu.memory_space<vmem>>, %arg4: memref<1x72xf32, #tpu.memory_space<vmem>>, %arg5: memref<64x128xbf16, #tpu.memory_space<vmem>>, %arg6: memref<8x128xf32, #tpu.memory_space<vmem>>, %arg7: memref<8x128xf32, #tpu.memory_space<vmem>>) attributes {dimension_semantics = [#tpu.dimension_semantics<parallel>, #tpu.dimension_semantics<arbitrary>], iteration_bounds = array<i64: 2, 1>, scalar_prefetch = 0 : i64, scratch_operands = 0 : i64, tpu.core_type = #tpu.core_type<tc>, window_params = [{transform_indices = @transform_0, window_bounds = array<i64: 64, 72>}, {pipeline_mode = #tpu.pipeline_mode<synchronous>, transform_indices = @transform_1, window_bounds = array<i64: 72, 128>}, {pipeline_mode = #tpu.pipeline_mode<synchronous>, transform_indices = @transform_2, window_bounds = array<i64: 1, 72>}, {transform_indices = @transform_3, window_bounds = array<i64: 64, 128>}, {transform_indices = @transform_4, window_bounds = array<i64: 8, 128>}, {transform_indices = @transform_5, window_bounds = array<i64: 8, 128>}]} {
    %c0 = arith.constant 0 : index
    %c0_0 = arith.constant 0 : index
    %0 = vector.load %arg2[%c0, %c0_0] : memref<64x72xbf16, #tpu.memory_space<vmem>>, vector<64x72xbf16>
    %1 = arith.extf %0 : vector<64x72xbf16> to vector<64x72xf32>
    %c0_1 = arith.constant 0 : index
    %c0_2 = arith.constant 0 : index
    %2 = vector.load %arg4[%c0_1, %c0_2] : memref<1x72xf32, #tpu.memory_space<vmem>>, vector<1x72xf32>
    %3 = vector.broadcast %2 : vector<1x72xf32> to vector<64x72xf32>
    %4 = arith.mulf %1, %3 : vector<64x72xf32>
    %cst = arith.constant 0.000000e+00 : f32
    %5 = vector.broadcast %cst : f32 to vector<64x72xf32>
    %6 = arith.maximumf %4, %5 : vector<64x72xf32>
    %7 = arith.truncf %6 : vector<64x72xf32> to vector<64x72xbf16>
    %c0_3 = arith.constant 0 : index
    %c0_4 = arith.constant 0 : index
    %8 = vector.load %arg3[%c0_3, %c0_4] : memref<72x128xbf16, #tpu.memory_space<vmem>>, vector<72x128xbf16>
    %cst_5 = arith.constant dense<0.000000e+00> : vector<64x128xf32>
    %9 = tpu.matmul %7, %8, %cst_5 {dimension_numbers = #tpu.dot_dimension_numbers<[1], [0], [0], [1], [0, 0, 1, 1], [], []>} : vector<64x72xbf16>, vector<72x128xbf16>, vector<64x128xf32> -> vector<64x128xf32>
    %10 = arith.truncf %9 : vector<64x128xf32> to vector<64x128xbf16>
    %c0_6 = arith.constant 0 : index
    %c0_7 = arith.constant 0 : index
    %11 = vector.load %arg5[%c0_6, %c0_7] : memref<64x128xbf16, #tpu.memory_space<vmem>>, vector<64x128xbf16>
    tpu.vector_store %arg5[%c0_6, %c0_7], %10 {strides = array<i32>} : memref<64x128xbf16, #tpu.memory_space<vmem>>, vector<64x128xbf16>,
    %c0_i32 = arith.constant 0 : i32
    %12 = arith.cmpi eq, %arg1, %c0_i32 : i32
    %13 = arith.extui %12 : i1 to i32
    %c0_i32_8 = arith.constant 0 : i32
    %14 = arith.cmpi ne, %13, %c0_i32_8 : i32
    scf.if %14 {
      %cst_19 = arith.constant 0.000000e+00 : f32
      %28 = vector.broadcast %cst_19 : f32 to vector<8x128xf32>
      %c0_20 = arith.constant 0 : index
      %c0_21 = arith.constant 0 : index
      %29 = vector.load %arg6[%c0_20, %c0_21] : memref<8x128xf32, #tpu.memory_space<vmem>>, vector<8x128xf32>
      tpu.vector_store %arg6[%c0_20, %c0_21], %28 {strides = array<i32>} : memref<8x128xf32, #tpu.memory_space<vmem>>, vector<8x128xf32>,
      %cst_22 = arith.constant 0.000000e+00 : f32
      %30 = vector.broadcast %cst_22 : f32 to vector<8x128xf32>
      %c0_23 = arith.constant 0 : index
      %c0_24 = arith.constant 0 : index
      %31 = vector.load %arg7[%c0_23, %c0_24] : memref<8x128xf32, #tpu.memory_space<vmem>>, vector<8x128xf32>
      tpu.vector_store %arg7[%c0_23, %c0_24], %30 {strides = array<i32>} : memref<8x128xf32, #tpu.memory_space<vmem>>, vector<8x128xf32>,
    } else {
    }
    %c0_9 = arith.constant 0 : index
    %c0_10 = arith.constant 0 : index
    %15 = vector.load %arg6[%c0_9, %c0_10] : memref<8x128xf32, #tpu.memory_space<vmem>>, vector<8x128xf32>
    %cst_11 = arith.constant dense<0.000000e+00> : vector<128xf32>
    %16 = vector.multi_reduction <add>, %9, %cst_11 [0] : vector<64x128xf32> to vector<128xf32>
    %17 = vector.shape_cast %16 : vector<128xf32> to vector<1x128xf32>
    %18 = vector.broadcast %17 : vector<1x128xf32> to vector<8x128xf32>
    %19 = arith.addf %15, %18 : vector<8x128xf32>
    %c0_12 = arith.constant 0 : index
    %c0_13 = arith.constant 0 : index
    %20 = vector.load %arg6[%c0_12, %c0_13] : memref<8x128xf32, #tpu.memory_space<vmem>>, vector<8x128xf32>
    tpu.vector_store %arg6[%c0_12, %c0_13], %19 {strides = array<i32>} : memref<8x128xf32, #tpu.memory_space<vmem>>, vector<8x128xf32>,
    %c0_14 = arith.constant 0 : index
    %c0_15 = arith.constant 0 : index
    %21 = vector.load %arg7[%c0_14, %c0_15] : memref<8x128xf32, #tpu.memory_space<vmem>>, vector<8x128xf32>
    %22 = arith.mulf %9, %9 : vector<64x128xf32>
    %cst_16 = arith.constant dense<0.000000e+00> : vector<128xf32>
    %23 = vector.multi_reduction <add>, %22, %cst_16 [0] : vector<64x128xf32> to vector<128xf32>
    %24 = vector.shape_cast %23 : vector<128xf32> to vector<1x128xf32>
    %25 = vector.broadcast %24 : vector<1x128xf32> to vector<8x128xf32>
    %26 = arith.addf %21, %25 : vector<8x128xf32>
    %c0_17 = arith.constant 0 : index
    %c0_18 = arith.constant 0 : index
    %27 = vector.load %arg7[%c0_17, %c0_18] : memref<8x128xf32, #tpu.memory_space<vmem>>, vector<8x128xf32>
    tpu.vector_store %arg7[%c0_17, %c0_18], %26 {strides = array<i32>} : memref<8x128xf32, #tpu.memory_space<vmem>>, vector<8x128xf32>,
    return
  }
  func.func @transform_0(%arg0: i32, %arg1: i32) -> (i32, i32) {
    %c1_i32 = arith.constant 1 : i32
    %0 = arith.muli %arg0, %c1_i32 : i32
    %1 = arith.addi %0, %arg1 : i32
    %c0_i32 = arith.constant 0 : i32
    %c0_i32_0 = arith.constant 0 : i32
    return %1, %c0_i32 : i32, i32
  }
  func.func @transform_1(%arg0: i32, %arg1: i32) -> (i32, i32) {
    %c0_i32 = arith.constant 0 : i32
    %c0_i32_0 = arith.constant 0 : i32
    %c0_i32_1 = arith.constant 0 : i32
    return %c0_i32, %c0_i32_0 : i32, i32
  }
  func.func @transform_2(%arg0: i32, %arg1: i32) -> (i32, i32) {
    %c0_i32 = arith.constant 0 : i32
    %c0_i32_0 = arith.constant 0 : i32
    %c0_i32_1 = arith.constant 0 : i32
    return %c0_i32, %c0_i32_0 : i32, i32
  }
  func.func @transform_3(%arg0: i32, %arg1: i32) -> (i32, i32) {
    %c1_i32 = arith.constant 1 : i32
    %0 = arith.muli %arg0, %c1_i32 : i32
    %1 = arith.addi %0, %arg1 : i32
    %c0_i32 = arith.constant 0 : i32
    %c0_i32_0 = arith.constant 0 : i32
    return %1, %c0_i32 : i32, i32
  }
  func.func @transform_4(%arg0: i32, %arg1: i32) -> (i32, i32) {
    %c0_i32 = arith.constant 0 : i32
    %c0_i32_0 = arith.constant 0 : i32
    return %arg0, %c0_i32 : i32, i32
  }
  func.func @transform_5(%arg0: i32, %arg1: i32) -> (i32, i32) {
    %c0_i32 = arith.constant 0 : i32
    %c0_i32_0 = arith.constant 0 : i32
    return %arg0, %c0_i32 : i32, i32
  }
}

module attributes {stable_mosaic.version = 11 : i64} {
  func.func @_bn_add_relu_kernel(%arg0: i32, %arg1: memref<64x128xbf16, #tpu.memory_space<vmem>>, %arg2: memref<64x128xbf16, #tpu.memory_space<vmem>>, %arg3: memref<1x128xf32, #tpu.memory_space<vmem>>, %arg4: memref<1x128xf32, #tpu.memory_space<vmem>>, %arg5: memref<1x128xf32, #tpu.memory_space<vmem>>, %arg6: memref<1x128xf32, #tpu.memory_space<vmem>>, %arg7: memref<64x128xf32, #tpu.memory_space<vmem>>) attributes {dimension_semantics = [#tpu.dimension_semantics<parallel>], iteration_bounds = array<i64: 2>, scalar_prefetch = 0 : i64, scratch_operands = 0 : i64, tpu.core_type = #tpu.core_type<tc>, window_params = [{transform_indices = @transform_0, window_bounds = array<i64: 64, 128>}, {transform_indices = @transform_1, window_bounds = array<i64: 64, 128>}, {pipeline_mode = #tpu.pipeline_mode<synchronous>, transform_indices = @transform_2, window_bounds = array<i64: 1, 128>}, {pipeline_mode = #tpu.pipeline_mode<synchronous>, transform_indices = @transform_3, window_bounds = array<i64: 1, 128>}, {pipeline_mode = #tpu.pipeline_mode<synchronous>, transform_indices = @transform_4, window_bounds = array<i64: 1, 128>}, {pipeline_mode = #tpu.pipeline_mode<synchronous>, transform_indices = @transform_5, window_bounds = array<i64: 1, 128>}, {transform_indices = @transform_6, window_bounds = array<i64: 64, 128>}]} {
    %c0 = arith.constant 0 : index
    %c0_0 = arith.constant 0 : index
    %0 = vector.load %arg1[%c0, %c0_0] : memref<64x128xbf16, #tpu.memory_space<vmem>>, vector<64x128xbf16>
    %1 = arith.extf %0 : vector<64x128xbf16> to vector<64x128xf32>
    %c0_1 = arith.constant 0 : index
    %c0_2 = arith.constant 0 : index
    %2 = vector.load %arg3[%c0_1, %c0_2] : memref<1x128xf32, #tpu.memory_space<vmem>>, vector<1x128xf32>
    %3 = vector.broadcast %2 : vector<1x128xf32> to vector<64x128xf32>
    %4 = arith.mulf %1, %3 : vector<64x128xf32>
    %c0_3 = arith.constant 0 : index
    %c0_4 = arith.constant 0 : index
    %5 = vector.load %arg4[%c0_3, %c0_4] : memref<1x128xf32, #tpu.memory_space<vmem>>, vector<1x128xf32>
    %6 = vector.broadcast %5 : vector<1x128xf32> to vector<64x128xf32>
    %7 = arith.addf %4, %6 : vector<64x128xf32>
    %c0_5 = arith.constant 0 : index
    %c0_6 = arith.constant 0 : index
    %8 = vector.load %arg2[%c0_5, %c0_6] : memref<64x128xbf16, #tpu.memory_space<vmem>>, vector<64x128xbf16>
    %9 = arith.extf %8 : vector<64x128xbf16> to vector<64x128xf32>
    %c0_7 = arith.constant 0 : index
    %c0_8 = arith.constant 0 : index
    %10 = vector.load %arg5[%c0_7, %c0_8] : memref<1x128xf32, #tpu.memory_space<vmem>>, vector<1x128xf32>
    %11 = vector.broadcast %10 : vector<1x128xf32> to vector<64x128xf32>
    %12 = arith.mulf %9, %11 : vector<64x128xf32>
    %c0_9 = arith.constant 0 : index
    %c0_10 = arith.constant 0 : index
    %13 = vector.load %arg6[%c0_9, %c0_10] : memref<1x128xf32, #tpu.memory_space<vmem>>, vector<1x128xf32>
    %14 = vector.broadcast %13 : vector<1x128xf32> to vector<64x128xf32>
    %15 = arith.addf %12, %14 : vector<64x128xf32>
    %16 = arith.addf %7, %15 : vector<64x128xf32>
    %cst = arith.constant 0.000000e+00 : f32
    %17 = vector.broadcast %cst : f32 to vector<64x128xf32>
    %18 = arith.maximumf %16, %17 : vector<64x128xf32>
    %c0_11 = arith.constant 0 : index
    %c0_12 = arith.constant 0 : index
    %19 = vector.load %arg7[%c0_11, %c0_12] : memref<64x128xf32, #tpu.memory_space<vmem>>, vector<64x128xf32>
    tpu.vector_store %arg7[%c0_11, %c0_12], %18 {strides = array<i32>} : memref<64x128xf32, #tpu.memory_space<vmem>>, vector<64x128xf32>,
    return
  }
  func.func @transform_0(%arg0: i32) -> (i32, i32) {
    %c0_i32 = arith.constant 0 : i32
    %c0_i32_0 = arith.constant 0 : i32
    return %arg0, %c0_i32 : i32, i32
  }
  func.func @transform_1(%arg0: i32) -> (i32, i32) {
    %c0_i32 = arith.constant 0 : i32
    %c0_i32_0 = arith.constant 0 : i32
    return %arg0, %c0_i32 : i32, i32
  }
  func.func @transform_2(%arg0: i32) -> (i32, i32) {
    %c0_i32 = arith.constant 0 : i32
    %c0_i32_0 = arith.constant 0 : i32
    %c0_i32_1 = arith.constant 0 : i32
    return %c0_i32, %c0_i32_0 : i32, i32
  }
  func.func @transform_3(%arg0: i32) -> (i32, i32) {
    %c0_i32 = arith.constant 0 : i32
    %c0_i32_0 = arith.constant 0 : i32
    %c0_i32_1 = arith.constant 0 : i32
    return %c0_i32, %c0_i32_0 : i32, i32
  }
  func.func @transform_4(%arg0: i32) -> (i32, i32) {
    %c0_i32 = arith.constant 0 : i32
    %c0_i32_0 = arith.constant 0 : i32
    %c0_i32_1 = arith.constant 0 : i32
    return %c0_i32, %c0_i32_0 : i32, i32
  }
  func.func @transform_5(%arg0: i32) -> (i32, i32) {
    %c0_i32 = arith.constant 0 : i32
    %c0_i32_0 = arith.constant 0 : i32
    %c0_i32_1 = arith.constant 0 : i32
    return %c0_i32, %c0_i32_0 : i32, i32
  }
  func.func @transform_6(%arg0: i32) -> (i32, i32) {
    %c0_i32 = arith.constant 0 : i32
    %c0_i32_0 = arith.constant 0 : i32
    return %arg0, %c0_i32 : i32, i32
  }
}

</mosaic_0001>

<bundles_post_ra>
// kernel: tile.8
= control target key start
LH: loop header
LB: loop body
LE: loop exit
PB: predicated region body
PF: predicated region fallthrough
CT: control target
= control target key end

     0   :  { %s28_s0 = inlined_call_operand.vmem [shape: f32[8], index: 0, kind: input, shape index: {}]   ;;  %s29_s1 = inlined_call_operand.vmem [shape: f32[9,8], index: 1, kind: output, shape index: {}]  }
   0x1   :  { %v4_v0 = vld [vmem:[%s28_s0] ss:$0 sm:$0xff] }
   0x2   :  { %5 = vst [vmem:[%s29_s1] sm:$0xff] %v4_v0  ;;  %8 = vst [vmem:[%s29_s1 + $0x8] sm:$0xff] %v4_v0 }

// kernel: tile.9
= control target key start
LH: loop header
LB: loop body
LE: loop exit
PB: predicated region body
PF: predicated region fallthrough
CT: control target
= control target key end

     0   :  { %s111_s10 = smov 64   ;;  %s112_s11 = smov 48   ;;  %vm4_vm0 = vcmask 64512   ;;  %s169_s0 = inlined_call_operand.vmem [shape: f32[9,8], index: 0, kind: input, shape index: {}]   ;;  %s170_s1 = inlined_call_operand.hbm [shape: f32[1,72], index: 1, kind: output, shape index: {}]  }
   0x1   :  { %v70_v0 = vld [vmem:[%s169_s0 + $0x8] sm:$0x1]   ;;  %v72_v1 = vld [vmem:[%s169_s0 + $0x6] sm:$0x1]   ;;  %v71_v2 = vld [vmem:[%s169_s0 + $0x7] sm:$0x1]  }
   0x2   :  { %8 = vrot.lane.b32.xlu0 %v70_v0, %s111_s10  ;;  %20 = vrot.lane.b32.xlu1 %v72_v1, %s112_s11  ;;  %v73_v3 = vld [vmem:[%s169_s0 + $0x5] sm:$0x1]   ;;  %v3_v4 = vld [vmem:[%s169_s0] sm:$0x1]   ;;  %s113_s18 = smov 56   ;;  %s114_s19 = smov 40  }
   0x3   :  { %5 = vst.msk [vmem:[#allocation2] sm:$0x1] %vm4_vm0, %v3_v4  }
   0x6   :  { %14 = vrot.lane.b32.xlu0 %v71_v2, %s113_s18  ;;  %26 = vrot.lane.b32.xlu1 %v73_v3, %s114_s19 }
   0x7   :  { %2 = vsyncpa [#allocation1], 0  ;;  %v74_v5 = vld [vmem:[%s169_s0 + $0x4] sm:$0x1]   ;;  %v75_v6 = vld [vmem:[%s169_s0 + $0x3] sm:$0x1]  }
   0x8   :  { %s115_s24 = smov 32   ;;  %s116_s25 = smov 24   ;;  %v76_v7 = vld [vmem:[%s169_s0 + $0x2] sm:$0x1]   ;;  %v77_v8 = vld [vmem:[%s169_s0 + $0x1] sm:$0x1]  }
   0x9   :  { %s117_s0 = smov 16   ;;  %s118_s30 = smov 8   ;;  %vm10_vm1 = vcmask 589312   ;;  %vm16_vm2 = vcmask 523712   ;;  %vm22_vm3 = vcmask 458112   ;;  %vm28_vm4 = vcmask 392512  }
   0xa   :  { %32 = vrot.lane.b32.xlu0 %v74_v5, %s115_s24  ;;  %38 = vrot.lane.b32.xlu1 %v75_v6, %s116_s25  ;;  %vm34_vm5 = vcmask 326912   ;;  %vm40_vm6 = vcmask 261312   ;;  %vm46_vm7 = vcmask 195712   ;;  %vm52_vm8 = vcmask 130112   ;;  %s119_s2 = smov [#allocation0]  }
   0xb   :  { %s64_s3 = sshll.u32 %s119_s2, 4  ;;  %s65_s3 = int_to_ptr.vmem [resolvable:$true] %s64_s3 }
   0xc   :  { %s87_s4 = scalar_lea.vmem %s65_s3, 16  ;;  %s91_s5 = scalar_lea.vmem %s65_s3, 32 }
   0xd   :  { %p88_p0 = scmp.ne.s32.totalorder %s65_s3, %s87_s4  ;;  %p92_p1 = scmp.lt.s32.totalorder %s65_s3, %s65_s3 }
   0xe   :  { %44 = vrot.lane.b32.xlu0 %v76_v7, %s117_s0  ;;  %50 = vrot.lane.b32.xlu1 %v77_v8, %s118_s30  ;;  %p93_p2 = scmp.lt.s32.totalorder %s91_s5, %s87_s4 }
  0x10   :  { %p94_p3 = por %p93_p2, %p92_p1 }
  0x12   :  { %p95_p4 = pnand %p94_p3, %p88_p0 }
  0x74   :  { %v9_v9 = vpop.permute.xlu0 %8   ;;  %v21_v10 = vpop.permute.xlu1 %20  }
  0x75   :  { %11 = vst.msk [vmem:[#allocation2] sm:$0x1] %vm10_vm1, %v9_v9  }
  0x78   :  { %v15_v11 = vpop.permute.xlu0 %14   ;;  %v27_v12 = vpop.permute.xlu1 %26  }
  0x79   :  { %17 = vst.msk [vmem:[#allocation2] sm:$0x1] %vm16_vm2, %v15_v11  }
  0x7a   :  { %23 = vst.msk [vmem:[#allocation2] sm:$0x1] %vm22_vm3, %v21_v10  }
  0x7b   :  { %29 = vst.msk [vmem:[#allocation2] sm:$0x1] %vm28_vm4, %v27_v12  }
  0x7c   :  { %v33_v13 = vpop.permute.xlu0 %32   ;;  %v39_v14 = vpop.permute.xlu1 %38  }
  0x7d   :  { %35 = vst.msk [vmem:[#allocation2] sm:$0x1] %vm34_vm5, %v33_v13  }
  0x7e   :  { %41 = vst.msk [vmem:[#allocation2] sm:$0x1] %vm40_vm6, %v39_v14  }
  0x80   :  { %v45_v15 = vpop.permute.xlu0 %44   ;;  %v51_v16 = vpop.permute.xlu1 %50  }
  0x81   :  { %47 = vst.msk [vmem:[#allocation2] sm:$0x1] %vm46_vm7, %v45_v15  }
  0x82   :  { %53 = vst.msk [vmem:[#allocation2] sm:$0x1] %vm52_vm8, %v51_v16  }
  0x89   :  { %v57_v17 = vld [vmem:[#allocation2] sm:$0x1] }
  0x8a   :  { %59 = vst [vmem:[#allocation0] sm:$0x1] %v57_v17 }
  0x8b   :  { %98 = shalt.err (!%p95_p4)
}
  0x8c   :  { %s99_s8 = scalar_lea.hbm %s170_s1, 16 }
  0x8d   :  { %p100_p5 = scmp.ne.s32.totalorder %s170_s1, %s99_s8  ;;  %p103_p6 = scmp.lt.u32.totalorder %s99_s8, %s170_s1 }
  0x8f   :  { %p105_p7 = pnand %p103_p6, %p100_p5 }
  0x91   :  { %108 = shalt.err (!%p105_p7)
}
  0x92   :  { %67 = dma.vmem_to_hbm [thread:$0]  %s65_s3, 16, %s170_s1, [#allocation1]  }
  0x93   :  { %109 = dma.done.wait [#allocation1], 16  }
  0x94   :  { %110 = vsyncadd [#allocation1], 4294967280 }
  0x95   :  { %69 = vsyncpa [#allocation1], 1 }

// kernel: basic_block_forward.3
= control target key start
LH: loop header
LB: loop body
LE: loop exit
PB: predicated region body
PF: predicated region fallthrough
CT: control target
= control target key end

     0   :  { %10 = vsyncpa [#allocation3], 0  ;;  %s1437_s0 = inlined_call_operand.hbm [shape: bf16[128,36], index: 0, kind: input, shape index: {}]   ;;  %s1438_s1 = inlined_call_operand.hbm [shape: bf16[36,128], index: 1, kind: input, shape index: {}]   ;;  %s1439_s2 = inlined_call_operand.hbm [shape: bf16[128,128], index: 2, kind: output, shape index: {0}]   ;;  %s1440_s3 = inlined_call_operand.hbm [shape: f32[16,128], index: 3, kind: output, shape index: {1}]   ;;  %s1441_s4 = inlined_call_operand.hbm [shape: f32[16,128], index: 4, kind: output, shape index: {2}]  }
   0x1   :  { %12 = vsyncpa [#allocation3 + $0x1], 0 }
   0x2   :  { %13 = vsyncpa [#allocation6], 0 }
   0x3   :  { %14 = vsyncpa [#allocation4], 0 }
   0x4   :  { %16 = vsyncpa [#allocation4 + $0x1], 0 }
   0x5   :  { %17 = vsyncpa [#allocation9], 0 }
   0x6   :  { %19 = vsyncpa [#allocation9 + $0x1], 0  ;;  %s1131_s15 = smov 0   ;;  %s1133_s16 = smov 0  }
   0x7   :  { %s1135_s17 = smov 0   ;;  %s1137_s18 = smov 0  }
   0x8   :  { %s1139_s19 = smov 0   ;;  %s1141_s20 = smov 0  }
   0x9 LB: > { %s1162_s21 = sadd.s32 4294967295, %s1095_s20   ;;  %s1445_s22 = sadd.s32 4294967294, %s1095_s20   ;;  %s1095_s20 = sphi %s1141_s20, %s25_s20   ;;  %s1091_s19 = sphi %s1139_s19, %s1465_s19   ;;  %s1087_s18 = sphi %s1137_s18, %s1464_s18   ;;  %s1083_s17 = sphi %s1135_s17, %s1463_s17   ;;  %s1079_s16 = sphi %s1133_s16, %s1462_s16   ;;  %s1075_s15 = sphi %s1131_s15, %s1461_s15  }
   0xa   : > { %p59_p0 = scmp.ne.s32.totalorder %s1079_s16, %s1075_s15  ;;  %p1442_p1 = scmp.eq.s32.totalorder %s1162_s21, 0 }
   0xb   : > { %p112_p3 = scmp.eq.s32.totalorder %s1445_s22, 1  ;;  %p694_p5 = scmp.ge.s32.totalorder %s1095_s20, 1 }
   0xc   : > { %p1173_p4 = por %p1442_p1, %p59_p0  ;;  %p171_p7 = scmp.lt.s32.totalorder %s1095_s20, 3 }
   0xd   : > { %p1178_p6 = por %p112_p3, %p59_p0  ;;  %s1097_s26 = smov [#allocation5]  }
   0xe   : > { %s1446_s23 = scalar_select %p1173_p4, 1, 0 }
   0xf   : > { %s1447_s24 = scalar_select %p1178_p6, 1, 0 }
  0x10   : > { %p1183_p8 = pnand %p694_p5, %p171_p7  ;;  %s183_s27 = sshll.u32 %s1097_s26, 4  ;;  %s184_s27 = int_to_ptr.vmem [resolvable:$true] %s183_s27 }
  0x11   : > { %s37_s29 = sadd.s32 1, %s1091_s19  ;;  %s891_s6 = scalar_lea.hbm %s1438_s1, 320 }
  0x12   : > { %s1448_s25 = scalar_select %p1183_p8, 1, 0 }
  0x13   : > { %p808_p9 = pneg %p1183_p8  ;;  %p892_p12 = scmp.ne.s32.totalorder %s1438_s1, %s891_s6 }
  0x14   : > { %p898_p5 = scmp.lt.u32.totalorder %s891_s6, %s1438_s1 }
  0x15   : > { %p1192_p11 = pnand %p808_p9, %p1442_p1 }
  0x17   : > { %p893_p13 = pneg %p1192_p11 }
  0x19   : > { %p894_p0 = pnand %p893_p13, %p892_p12 }
  0x1b   : > { %p895_p3 = pneg %p894_p0 }
  0x1d   : > { %p900_p7 = pnand %p898_p5, %p895_p3 }
  0x1f   : > { %903 = shalt.err (!%p900_p7)
}
  0x20   : > { %s904_s11 = scalar_lea.vmem %s184_s27, 320  ;;  %p912_p2 = scmp.lt.s32.totalorder %s184_s27, %s184_s27 }
  0x21   : > { %p905_p9 = scmp.ne.s32.totalorder %s184_s27, %s904_s11  ;;  %p913_p6 = scmp.lt.s32.totalorder %s904_s11, %s904_s11 }
  0x23   : > { %p907_p10 = pnand %p905_p9, %p893_p13  ;;  %p914_p4 = por %p913_p6, %p912_p2 }
  0x25   : > { %p908_p1 = pneg %p907_p10 }
  0x27   : > { %p915_p8 = pnand %p914_p4, %p908_p1 }
  0x29   : > { %918 = shalt.err (!%p915_p8)
}
  0x2a   : > { %s1098_s12 = smov 64   ;;  %s1099_s13 = smov 4  }
  0x2b   : > { %811 = dma.hbm_to_vmem [thread:$0]  (!%p1192_p11), %s1438_s1, 320, %s184_s27, [#allocation6], %s1098_s12, %s1098_s12, %s1099_s13  }
  0x2c   : > { %p39_p1 = scmp.ge.s32.totalorder %s37_s29, 2  ;;  %s46_s30 = sadd.s32 1, %s1083_s17 }
  0x2d   : > { %p53_p2 = scmp.ne.s32.totalorder %s1083_s17, %s1079_s16  ;;  %p54_p4 = scmp.eq.s32.totalorder %s1095_s20, 0 }
  0x2e   : > { %s1467_s29 = smov (%p39_p1, %s37_s29), 0  ;;  %p1451_p8 = scmp.eq.s32.totalorder %s1162_s21, 1 }
  0x2f   : > { %p1222_p6 = por %p54_p4, %p53_p2  ;;  %s43_s6 = ssub.s32 %s1091_s19, %s1467_s29 }
  0x30   : > { %p1228_p10 = por %p1451_p8, %p53_p2  ;;  %p827_p12 = scmp.lt.s32.totalorder %s1095_s20, 2 }
  0x31   : > { %p44_p11 = scmp.eq.s32.totalorder %s43_s6, 0  ;;  %s197_s27 = sand.u32 1, %s1083_s17  }
  0x32   : > { %s697_s7 = sshll.u32 %s197_s27, 5  ;;  %s734_s9 = sshll.u32 %s1091_s19, 9 }
  0x33   : > { %s1237_s8 = scalar_select %p44_p11, %s1083_s17, %s46_s30  }
  0x34   : > { %s1243_s14 = scalar_lea.hbm %s1437_s0, %s734_s9  ;;  %s201_s26 = scalar_lea.vmem [#allocation2], %s697_s7 }
  0x35   : > { %s209_s22 = sshll.u32 %s201_s26, 4  ;;  %p1249_p13 = pnand %p827_p12, %p1222_p6  ;;  %s1245_s22 = int_to_ptr.vmem [resolvable:$true] %s209_s22 }
  0x36   : > { %s1253_s30 = scalar_lea.sflag [#allocation3], %s197_s27  ;;  %s919_s10 = scalar_lea.hbm %s1243_s14, 512 }
  0x37   : > { %p920_p0 = scmp.ne.s32.totalorder %s1243_s14, %s919_s10  ;;  %p921_p3 = pneg %p1249_p13 }
  0x38   : > { %s924_s5 = scalar_lea.hbm %s1437_s0, 1024  ;;  %p925_p9 = scmp.lt.u32.totalorder %s1243_s14, %s1437_s0 }
  0x39   : > { %p922_p5 = pnand %p921_p3, %p920_p0  ;;  %p926_p1 = scmp.lt.u32.totalorder %s924_s5, %s919_s10 }
  0x3a   : > { %p928_p4 = scmp.lt.u32.totalorder %s919_s10, %s1243_s14 }
  0x3b   : > { %p923_p7 = pneg %p922_p5  ;;  %p927_p2 = por %p926_p1, %p925_p9 }
  0x3d   : > { %p929_p6 = por %p928_p4, %p927_p2 }
  0x3f   : > { %p930_p8 = pnand %p929_p6, %p923_p7 }
  0x41   : > { %933 = shalt.err (!%p930_p8)
}
  0x42   : > { %s934_s27 = scalar_lea.vmem %s1245_s22, 512  ;;  %s1100_s7 = smov [#allocation2]  }
  0x43   : > { %p935_p12 = scmp.ne.s32.totalorder %s1245_s22, %s934_s27  ;;  %s939_s9 = sshll.u32 %s1100_s7, 4  ;;  %s940_s9 = int_to_ptr.vmem [resolvable:$false] %s939_s9 }
  0x44   : > { %s941_s11 = scalar_lea.vmem %s940_s9, 1024  ;;  %p942_p5 = scmp.lt.s32.totalorder %s1245_s22, %s940_s9 }
  0x45   : > { %p937_p11 = pnand %p935_p12, %p921_p3  ;;  %p943_p9 = scmp.lt.s32.totalorder %s941_s11, %s934_s27 }
  0x47   : > { %p938_p0 = pneg %p937_p11  ;;  %p944_p1 = por %p943_p9, %p942_p5 }
  0x49   : > { %p945_p2 = pnand %p944_p1, %p938_p0 }
  0x4b   : > { %948 = shalt.err (!%p945_p2)
}
  0x4c   : > { %815 = dma.hbm_to_vmem [thread:$0]  (!%p1249_p13), %s1243_s14, 512, %s1245_s22, %s1253_s30, %s1098_s12, %s1098_s12, %s1099_s13  }
  0x4d   : > { %p1454_p3 = scmp.ne.s32.totalorder %s1448_s25, 0 }
  0x4e   : > { %s1287_s10 = sand.u32 (!%p1454_p3), 1, %s1079_s16   ;;  %p1455_p7 = scmp.ne.s32.totalorder (!%p1454_p3), %s1446_s23, 0 }
  0x4f   : > { %221 = sbr.rel (%p1454_p3) target bundleno = 391 (0x187), region = 28  ;;  %s701_s5 = sshll.u32 (!%p1454_p3), %s1287_s10, 5 }
  0x50   : > { %s224_s26 = scalar_lea.sflag (!%p1454_p3), [#allocation3], %s1287_s10  ;;  %s227_s6 = scalar_lea.vmem (!%p1454_p3), [#allocation2], %s701_s5 }
  0x56   : > { %1058 = dma.done.wait (%p1455_p7), %s224_s26, 512  }
  0x57   : > { %1060 = vsyncadd (%p1455_p7), %s224_s26, 4294966784  ;;  %p1456_p13 = scmp.eq.s32.totalorder %s1162_s21, 0 }
  0x59   : > { %1062 = dma.done.wait (%p1456_p13), [#allocation6], 320   ;;  %p1457_p4 = pmov %p1456_p13 }
  0x5a   : > { %v884_v0 = vld [vmem:[#allocation5] sm:$0xff]   ;;  %v885_v1 = vld [vmem:[#allocation5 + $0x8] sm:$0xff]   ;;  %vm319_vm0 = vcmask 293888   ;;  %v886_v2 = vld [vmem:[#allocation5 + $0x10] ss:$0 sps:$4 sm:$0x33]  }
  0x5b   : > { %1064 = vsyncadd (%p1457_p4), [#allocation6], 4294966976  ;;  %774 = vmatprep.subr.bf16.mxu0 %v884_v0  ;;  %788 = vmatprep.subr.bf16.mxu1 %v884_v0  ;;  %v887_v3 = vld [vmem:[%s227_s6] sm:$0xff]   ;;  %vm332_vm1 = vcmask 1041408   ;;  %v889_v4 = vld [vmem:[%s227_s6 + $0x10] sm:$0xff]   ;;  %s251_s22 = scalar_lea.vmem [#allocation7], %s701_s5 }
  0x5c   : > { %775 = vmatpush3.bf16.msra.mxu0 %v884_v0  ;;  %791 = vmatpush3.bf16.msra.mxu1 %v884_v0  ;;  %v334_v5 = vsel %vm332_vm1, %v886_v2, 0  ;;  %v888_v6 = vld [vmem:[%s227_s6 + $0x8] sm:$0xff]   ;;  %v890_v7 = vld [vmem:[%s227_s6 + $0x18] sm:$0xff]   ;;  %s512_s23 = sshll.u32 %s251_s22, 4  ;;  %s743_s25 = sshll.u32 %s1087_s18, 9  ;;  %s1310_s23 = int_to_ptr.vmem [resolvable:$true] %s512_s23 }
  0x5d   : > { %776 = vmatprep.subr.bf16.mxu0 %v885_v1  ;;  %789 = vmatprep.subr.bf16.mxu1 %v885_v1  ;;  %s1316_s14 = scalar_lea.hbm %s1439_s2, %s743_s25  ;;  %s488_s30 = scalar_lea.sflag [#allocation4], %s1287_s10 }
  0x5e   : > { %780 = vmatprep.mubr.msk.bf16.mxu0 %vm319_vm0, %v887_v3  ;;  %784 = vmatprep.mubr.msk.bf16.mxu1 %vm319_vm0, %v889_v4  ;;  %s949_s27 = scalar_lea.vmem %s1310_s23, 512  ;;  %s1101_s7 = smov [#allocation7]  }
  0x5f   : > { %p950_p6 = scmp.ne.s32.totalorder %s1310_s23, %s949_s27  ;;  %s953_s9 = sshll.u32 %s1101_s7, 4  ;;  %s954_s9 = int_to_ptr.vmem [resolvable:$false] %s953_s9 }
  0x60   : > { %777 = vmatpush3.bf16.msra.mxu0 %v885_v1  ;;  %792 = vmatpush3.bf16.msra.mxu1 %v885_v1  ;;  %s955_s11 = scalar_lea.vmem %s954_s9, 1024  ;;  %p956_p11 = scmp.lt.s32.totalorder %s1310_s23, %s954_s9 }
  0x61   : > { %794 = vmatprep.subr.msk.bf16.mxu0 %vm332_vm1, %v886_v2  ;;  %795 = vmatprep.subr.msk.bf16.mxu1 %vm332_vm1, %v886_v2  ;;  %p951_p8 = pnand %p950_p6, %p1228_p10  ;;  %p957_p0 = scmp.lt.s32.totalorder %s955_s11, %s949_s27 }
  0x63   : > { %p952_p12 = pneg %p951_p8  ;;  %p958_p5 = por %p957_p0, %p956_p11 }
  0x64   : > { %779 = vmatpush3.bf16.msra.mxu0 %v334_v5  ;;  %793 = vmatpush3.bf16.msra.mxu1 %v334_v5 }
  0x65   : > { %p959_p9 = pnand %p958_p5, %p952_p12 }
  0x67   : > { %781 = vmatmul.mubr.msk.bf16.vlgmr.msra.gmra.mrb[0].mxu0 %vm319_vm0, %v888_v6  ;;  %785 = vmatmul.mubr.msk.bf16.vlgmr.msra.gmra.mrb[0].mxu1 %vm319_vm0, %v890_v7 }
 0x13a   : > { %v782_v8 = vpop.f32.mrb[0].mxu0  ;;  %v1307_v9 = vpop.f32.mrb[0].mxu1 }
 0x13b   : > { %v370_v10 = vpop.f32.mrb[1].mxu0  ;;  %v386_v11 = vpop.f32.mrb[1].mxu1  ;;  %v466_v23 = vmul.f32 %v782_v8, %v782_v8 }
 0x13c   : > { %v783_v12 = vpop.f32.mrb[2].mxu0  ;;  %v787_v13 = vpop.f32.mrb[2].mxu1  ;;  %v464_v14 = vmul.f32 %v370_v10, %v370_v10 }
 0x13d   : > { %v752_v15 = vpack.c.bf16 %v783_v12, %v782_v8  ;;  %v373_v16 = vpop.f32.mrb[3].mxu0  ;;  %v762_v17 = vpack.c.bf16 %v787_v13, %v1307_v9  ;;  %v389_v18 = vpop.f32.mrb[3].mxu1 }
 0x13e   : > { %v747_v19 = vpack.c.bf16 %v373_v16, %v370_v10  ;;  %v448_v20 = vadd.f32 %v373_v16, %v370_v10  ;;  %v465_v21 = vmul.f32 %v373_v16, %v373_v16  ;;  %v757_v22 = vpack.c.bf16 %v389_v18, %v386_v11 }
 0x13f   : > { %764 = vst [vmem:[%s251_s22 + $0x8] sm:$0xff] %v752_v15   ;;  %766 = vst [vmem:[%s251_s22 + $0x18] sm:$0xff] %v762_v17  }
 0x140   : > { %748 = vst [vmem:[%s251_s22] sm:$0xff] %v747_v19   ;;  %v449_v24 = vadd.f32 %v782_v8, %v448_v20  ;;  %v472_v25 = vadd.f32 %v465_v21, %v464_v14  ;;  %765 = vst [vmem:[%s251_s22 + $0x10] sm:$0xff] %v757_v22  }
 0x141   : > { %962 = shalt.err (!%p959_p9)
}
 0x142   : > { %s963_s5 = scalar_lea.hbm %s1316_s14, 512  ;;  %s967_s22 = scalar_lea.hbm %s1439_s2, 1024 }
 0x143   : > { %p964_p1 = scmp.ne.s32.totalorder %s1316_s14, %s963_s5  ;;  %p968_p7 = scmp.lt.u32.totalorder %s1316_s14, %s1439_s2 }
 0x144   : > { %p969_p13 = scmp.lt.u32.totalorder %s967_s22, %s963_s5  ;;  %p971_p6 = scmp.lt.u32.totalorder %s963_s5, %s1316_s14 }
 0x145   : > { %p965_p2 = pnand %p964_p1, %p1228_p10 }
 0x146   : > { %p970_p4 = por %p969_p13, %p968_p7 }
 0x147   : > { %p966_p3 = pneg %p965_p2 }
 0x148   : > { %p972_p8 = por %p971_p6, %p970_p4 }
 0x14a   : > { %p973_p12 = pnand %p972_p8, %p966_p3 }
 0x14c   : > { %976 = shalt.err (!%p973_p12)
}
 0x14d   : > { %s1102_s13 = smov 64   ;;  %s1103_s27 = smov 4   ;;  %v467_v26 = vmul.f32 %v783_v12, %v783_v12  ;;  %v473_v27 = vadd.f32 %v472_v25, %v466_v23  ;;  %v450_v28 = vadd.f32 %v783_v12, %v449_v24  ;;  %v468_v29 = vmul.f32 %v386_v11, %v386_v11 }
 0x14e   : > { %802 = dma.vmem_to_hbm [thread:$0]  (%p1228_p10), %s1310_s23, 512, %s1316_s14, %s488_s30, %s1102_s13, %s1102_s13, %s1103_s27   ;;  %v469_v34 = vmul.f32 %v389_v18, %v389_v18  ;;  %v470_v35 = vmul.f32 %v1307_v9, %v1307_v9  ;;  %v471_v38 = vmul.f32 %v787_v13, %v787_v13 }
 0x14f   : > { %v451_v30 = vadd.f32 %v450_v28, %v386_v11  ;;  %v474_v31 = vadd.f32 %v473_v27, %v467_v26  ;;  %s704_s23 = sshll.u32 %s1287_s10, 3  ;;  %s492_s14 = sand.u32 1, %s1162_s21  }
 0x150   : > { %s730_s30 = sshll.u32 %s1087_s18, 7  ;;  %s258_s7 = scalar_lea.vmem [#allocation8], %s704_s23 }
 0x151   : > { %v475_v32 = vadd.f32 %v474_v31, %v468_v29  ;;  %v452_v33 = vadd.f32 %v451_v30, %v389_v18  ;;  %s528_s9 = sshll.u32 %s258_s7, 4  ;;  %s1348_s11 = scalar_lea.vmem [#allocation10], %s704_s23  ;;  %s1356_s9 = int_to_ptr.vmem [resolvable:$true] %s528_s9 }
 0x152   : > { %s541_s5 = sshll.u32 %s1348_s11, 4  ;;  %s1354_s6 = scalar_lea.hbm %s1440_s3, %s730_s30  ;;  %s1363_s5 = int_to_ptr.vmem [resolvable:$true] %s541_s5 }
 0x153   : > { %v453_v36 = vadd.f32 %v1307_v9, %v452_v33  ;;  %v476_v37 = vadd.f32 %v475_v32, %v469_v34  ;;  %s1361_s22 = scalar_lea.hbm %s1441_s4, %s730_s30  ;;  %s1365_s25 = scalar_lea.sflag [#allocation9], %s492_s14 }
 0x154   : > { %s977_s12 = scalar_lea.vmem %s1356_s9, 128  ;;  %s1104_s13 = smov [#allocation8]  }
 0x155   : > { %v454_v39 = vadd.f32 %v787_v13, %v453_v36  ;;  %v477_v40 = vadd.f32 %v476_v37, %v470_v35  ;;  %p978_p11 = scmp.ne.s32.totalorder %s1356_s9, %s977_s12  ;;  %s981_s27 = sshll.u32 %s1104_s13, 4  ;;  %s982_s27 = int_to_ptr.vmem [resolvable:$false] %s981_s27 }
 0x156   : > { %s983_s23 = scalar_lea.vmem %s982_s27, 256  ;;  %p984_p9 = scmp.lt.s32.totalorder %s1356_s9, %s982_s27 }
 0x157   : > { %v455_v41 = vrot.slane %v454_v39, 4  ;;  %v478_v42 = vadd.f32 %v477_v40, %v471_v38  ;;  %p979_p0 = pnand %p978_p11, %p1228_p10  ;;  %p985_p1 = scmp.lt.s32.totalorder %s983_s23, %s977_s12 }
 0x159   : > { %v456_v43 = vadd.f32 %v455_v41, %v454_v39  ;;  %v479_v44 = vrot.slane %v478_v42, 4  ;;  %p980_p5 = pneg %p979_p0  ;;  %p986_p2 = por %p985_p1, %p984_p9 }
 0x15b   : > { %v457_v45 = vrot.slane %v456_v43, 2  ;;  %v480_v46 = vadd.f32 %v479_v44, %v478_v42  ;;  %p987_p3 = pnand %p986_p2, %p980_p5 }
 0x15d   : > { %v458_v47 = vadd.f32 %v457_v45, %v456_v43  ;;  %v481_v48 = vrot.slane %v480_v46, 2 }
 0x15f   : > { %v459_v49 = vrot.slane %v458_v47, 1  ;;  %v482_v50 = vadd.f32 %v481_v48, %v480_v46 }
 0x161   : > { %v460_v51 = vadd.f32 %v459_v49, %v458_v47  ;;  %v483_v52 = vrot.slane %v482_v50, 1 }
 0x163   : > { %v484_v53 = vadd.f32 %v483_v52, %v482_v50  ;;  %462 = vst [vmem:[%s258_s7] sm:$0xff] %v460_v51 }
 0x164   : > { %990 = shalt.err (!%p987_p3)
}
 0x165   : > { %s991_s14 = scalar_lea.hbm %s1354_s6, 128  ;;  %s995_s26 = scalar_lea.hbm %s1440_s3, 256 }
 0x166   : > { %p992_p7 = scmp.ne.s32.totalorder %s1354_s6, %s991_s14  ;;  %p996_p6 = scmp.lt.u32.totalorder %s1354_s6, %s1440_s3 }
 0x167   : > { %p997_p8 = scmp.lt.u32.totalorder %s995_s26, %s991_s14  ;;  %p999_p11 = scmp.lt.u32.totalorder %s991_s14, %s1354_s6 }
 0x168   : > { %p993_p13 = pnand %p992_p7, %p1228_p10 }
 0x169   : > { %p998_p12 = por %p997_p8, %p996_p6 }
 0x16a   : > { %p994_p4 = pneg %p993_p13 }
 0x16b   : > { %p1000_p0 = por %p999_p11, %p998_p12 }
 0x16d   : > { %p1001_p5 = pnand %p1000_p0, %p994_p4 }
 0x16f   : > { %1004 = shalt.err (!%p1001_p5)
}
 0x170   : > { %803 = dma.vmem_to_hbm [thread:$0]  (%p1228_p10), %s1356_s9, 128, %s1354_s6, %s1365_s25   ;;  %486 = vst [vmem:[%s1348_s11] sm:$0xff] %v484_v53 }
 0x171   : > { %s1005_s21 = scalar_lea.vmem %s1363_s5, 128  ;;  %s1105_s12 = smov [#allocation10]  }
 0x172   : > { %p1006_p9 = scmp.ne.s32.totalorder %s1363_s5, %s1005_s21  ;;  %s1009_s13 = sshll.u32 %s1105_s12, 4  ;;  %s1010_s13 = int_to_ptr.vmem [resolvable:$false] %s1009_s13 }
 0x173   : > { %s1011_s27 = scalar_lea.vmem %s1010_s13, 256  ;;  %p1012_p3 = scmp.lt.s32.totalorder %s1363_s5, %s1010_s13 }
 0x174   : > { %p1007_p1 = pnand %p1006_p9, %p1228_p10  ;;  %p1013_p7 = scmp.lt.s32.totalorder %s1011_s27, %s1005_s21 }
 0x176   : > { %p1008_p2 = pneg %p1007_p1  ;;  %p1014_p13 = por %p1013_p7, %p1012_p3 }
 0x178   : > { %p1015_p4 = pnand %p1014_p13, %p1008_p2 }
 0x17a   : > { %1018 = shalt.err (!%p1015_p4)
}
 0x17b   : > { %s1019_s9 = scalar_lea.hbm %s1361_s22, 128  ;;  %s1023_s23 = scalar_lea.hbm %s1441_s4, 256 }
 0x17c   : > { %p1020_p6 = scmp.ne.s32.totalorder %s1361_s22, %s1019_s9  ;;  %p1024_p11 = scmp.lt.u32.totalorder %s1361_s22, %s1441_s4 }
 0x17d   : > { %p1025_p0 = scmp.lt.u32.totalorder %s1023_s23, %s1019_s9  ;;  %p1027_p9 = scmp.lt.u32.totalorder %s1019_s9, %s1361_s22 }
 0x17e   : > { %p1021_p8 = pnand %p1020_p6, %p1228_p10 }
 0x17f   : > { %p1026_p5 = por %p1025_p0, %p1024_p11 }
 0x180   : > { %p1022_p12 = pneg %p1021_p8 }
 0x181   : > { %p1028_p1 = por %p1027_p9, %p1026_p5 }
 0x183   : > { %p1029_p2 = pnand %p1028_p1, %p1022_p12 }
 0x185   : > { %1032 = shalt.err (!%p1029_p2)
}
 0x186   : > { %804 = dma.vmem_to_hbm [thread:$0]  (%p1228_p10), %s1363_s5, 128, %s1361_s22, %s1365_s25  }
 0x187 PF: > { %s553_s7 = sand.u32 1, %s1075_s15   ;;  %p1458_p3 = scmp.ne.s32.totalorder %s1447_s24, 0 }
 0x188   : > { %p1459_p7 = scmp.ge.s32.totalorder %s1095_s20, 2  ;;  %s554_s26 = scalar_lea.sflag [#allocation4], %s553_s7 }
 0x18a   : > { %p817_p13 = pnand %p1459_p7, %p1458_p3 }
 0x18c   : > { %1066 = dma.done.wait (!%p817_p13), %s554_s26, 512  }
 0x18d   : > { %1068 = vsyncadd (!%p817_p13), %s554_s26, 4294966784  ;;  %s1460_s10 = sadd.s32 4294967294, %s1095_s20  }
 0x18e   : > { %s562_s18 = sand.u32 1, %s1460_s10  }
 0x18f   : > { %s563_s21 = scalar_lea.sflag [#allocation9], %s562_s18 }
 0x190   : > { %1070 = dma.done.wait (!%p817_p13), %s563_s21, 256  }
 0x191   : > { %1072 = vsyncadd (!%p817_p13), %s563_s21, 4294967040  ;;  %s25_s20 = sadd.s32 1, %s1095_s20   ;;  %s1461_s15 = smov %s1079_s16 }
 0x192   : > { %p22_p10 = scmp.ge.s32.totalorder %s25_s20, 4   ;;  %s1462_s16 = smov %s1083_s17 }
 0x193   : > { %s1463_s17 = smov %s1237_s8  ;;  %s1464_s18 = smov %s1091_s19 }
 0x194   : > { %s1465_s19 = smov %s1467_s29  ;;  %24 = sbr.rel (!%p22_p10) target bundleno = 9 (0x9), region = 113 }
 0x19b   :  { %577 = vsyncpa [#allocation3], 1 }
 0x19c   :  { %579 = vsyncpa [#allocation3 + $0x1], 1 }
 0x19d   :  { %580 = vsyncpa [#allocation6], 1 }
 0x19e   :  { %581 = vsyncpa [#allocation4], 1 }
 0x19f   :  { %583 = vsyncpa [#allocation4 + $0x1], 1 }
 0x1a0   :  { %584 = vsyncpa [#allocation9], 1 }
 0x1a1   :  { %586 = vsyncpa [#allocation9 + $0x1], 1 }

// kernel: basic_block_forward.4
= control target key start
LH: loop header
LB: loop body
LE: loop exit
PB: predicated region body
PF: predicated region fallthrough
CT: control target
= control target key end

     0   :  { %11 = vsyncpa [#allocation3], 0  ;;  %s1625_s0 = inlined_call_operand.hbm [shape: bf16[128,72], index: 0, kind: input, shape index: {}]   ;;  %s1626_s1 = inlined_call_operand.hbm [shape: bf16[72,128], index: 1, kind: input, shape index: {}]   ;;  %s1627_s2 = inlined_call_operand.hbm [shape: f32[1,72], index: 2, kind: input, shape index: {}]   ;;  %s1628_s3 = inlined_call_operand.hbm [shape: bf16[128,128], index: 3, kind: output, shape index: {0}]   ;;  %s1629_s4 = inlined_call_operand.hbm [shape: f32[16,128], index: 4, kind: output, shape index: {1}]   ;;  %s1630_s5 = inlined_call_operand.hbm [shape: f32[16,128], index: 5, kind: output, shape index: {2}]  }
   0x1   :  { %13 = vsyncpa [#allocation3 + $0x1], 0 }
   0x2   :  { %14 = vsyncpa [#allocation6], 0 }
   0x3   :  { %15 = vsyncpa [#allocation4], 0 }
   0x4   :  { %17 = vsyncpa [#allocation4 + $0x1], 0 }
   0x5   :  { %18 = vsyncpa [#allocation10], 0 }
   0x6   :  { %20 = vsyncpa [#allocation10 + $0x1], 0  ;;  %s1282_s18 = smov 0   ;;  %s1284_s19 = smov 0  }
   0x7   :  { %s1286_s20 = smov 0   ;;  %s1288_s21 = smov 0  }
   0x8   :  { %s1290_s22 = smov 0   ;;  %s1292_s23 = smov 0  }
   0x9 LB: > { %s1313_s24 = sadd.s32 4294967295, %s1240_s23   ;;  %s1632_s25 = sadd.s32 4294967294, %s1240_s23   ;;  %s1240_s23 = sphi %s1292_s23, %s26_s23   ;;  %s1236_s22 = sphi %s1290_s22, %s1655_s22   ;;  %s1232_s21 = sphi %s1288_s21, %s1654_s21   ;;  %s1228_s20 = sphi %s1286_s20, %s1653_s20   ;;  %s1224_s19 = sphi %s1284_s19, %s1652_s19   ;;  %s1220_s18 = sphi %s1282_s18, %s1651_s18  }
   0xa   : > { %p60_p0 = scmp.ne.s32.totalorder %s1224_s19, %s1220_s18  ;;  %p1631_p1 = scmp.eq.s32.totalorder %s1313_s24, 0 }
   0xb   : > { %p134_p3 = scmp.eq.s32.totalorder %s1632_s25, 1  ;;  %p773_p5 = scmp.ge.s32.totalorder %s1240_s23, 1 }
   0xc   : > { %p1324_p4 = por %p1631_p1, %p60_p0  ;;  %p193_p7 = scmp.lt.s32.totalorder %s1240_s23, 3 }
   0xd   : > { %p1329_p6 = por %p134_p3, %p60_p0  ;;  %s1242_s29 = smov [#allocation5]  }
   0xe   : > { %s1636_s26 = scalar_select %p1324_p4, 1, 0 }
   0xf   : > { %s1637_s27 = scalar_select %p1329_p6, 1, 0 }
  0x10   : > { %p1334_p8 = pnand %p773_p5, %p193_p7  ;;  %s205_s30 = sshll.u32 %s1242_s29, 4  ;;  %s1338_s30 = int_to_ptr.vmem [resolvable:$true] %s205_s30 }
  0x11   : > { %s1243_s7 = smov [#allocation7]   ;;  %s1008_s11 = scalar_lea.hbm %s1626_s1, 576 }
  0x12   : > { %p921_p9 = pneg %p1334_p8  ;;  %s219_s8 = sshll.u32 %s1243_s7, 4  ;;  %s1349_s8 = int_to_ptr.vmem [resolvable:$true] %s219_s8 }
  0x13   : > { %p1009_p12 = scmp.ne.s32.totalorder %s1626_s1, %s1008_s11  ;;  %p1015_p5 = scmp.lt.u32.totalorder %s1008_s11, %s1626_s1 }
  0x14   : > { %p1345_p11 = pnand %p921_p9, %p1631_p1 }
  0x16   : > { %p1010_p13 = pneg %p1345_p11 }
  0x18   : > { %p1011_p0 = pnand %p1010_p13, %p1009_p12 }
  0x1a   : > { %p1012_p3 = pneg %p1011_p0 }
  0x1c   : > { %p1017_p7 = pnand %p1015_p5, %p1012_p3 }
  0x1e   : > { %1020 = shalt.err (!%p1017_p7)
}
  0x1f   : > { %s1021_s16 = scalar_lea.vmem %s1338_s30, 576  ;;  %p1029_p2 = scmp.lt.s32.totalorder %s1338_s30, %s1338_s30 }
  0x20   : > { %p1022_p9 = scmp.ne.s32.totalorder %s1338_s30, %s1021_s16  ;;  %p1030_p12 = scmp.lt.s32.totalorder %s1021_s16, %s1021_s16 }
  0x22   : > { %p1024_p10 = pnand %p1022_p9, %p1010_p13  ;;  %p1031_p0 = por %p1030_p12, %p1029_p2 }
  0x24   : > { %p1025_p1 = pneg %p1024_p10 }
  0x26   : > { %p1032_p6 = pnand %p1031_p0, %p1025_p1 }
  0x28   : > { %1035 = shalt.err (!%p1032_p6)
}
  0x29   : > { %s1633_s17 = smov 64   ;;  %s1245_s29 = smov 4  }
  0x2a   : > { %924 = dma.hbm_to_vmem [thread:$0]  (!%p1345_p11), %s1626_s1, 576, %s1338_s30, [#allocation6], %s1633_s17, %s1633_s17, %s1245_s29  }
  0x2b   : > { %s1036_s12 = scalar_lea.hbm %s1627_s2, 16 }
  0x2c   : > { %p1037_p1 = scmp.ne.s32.totalorder %s1627_s2, %s1036_s12  ;;  %p1043_p10 = scmp.lt.u32.totalorder %s1036_s12, %s1627_s2 }
  0x2e   : > { %p1039_p2 = pnand %p1037_p1, %p1010_p13 }
  0x30   : > { %p1040_p6 = pneg %p1039_p2 }
  0x32   : > { %p1045_p3 = pnand %p1043_p10, %p1040_p6 }
  0x34   : > { %1048 = shalt.err (!%p1045_p3)
}
  0x35   : > { %s1049_s30 = scalar_lea.vmem %s1349_s8, 16  ;;  %s1056_s7 = scalar_lea.vmem %s1349_s8, 32 }
  0x36   : > { %p1050_p5 = scmp.ne.s32.totalorder %s1349_s8, %s1049_s30  ;;  %p1057_p12 = scmp.lt.s32.totalorder %s1349_s8, %s1349_s8 }
  0x37   : > { %p1058_p0 = scmp.lt.s32.totalorder %s1056_s7, %s1049_s30 }
  0x38   : > { %p1052_p7 = pnand %p1050_p5, %p1010_p13 }
  0x39   : > { %p1059_p1 = por %p1058_p0, %p1057_p12 }
  0x3a   : > { %p1053_p9 = pneg %p1052_p7 }
  0x3c   : > { %p1060_p2 = pnand %p1059_p1, %p1053_p9 }
  0x3e   : > { %1063 = shalt.err (!%p1060_p2)
}
  0x3f   : > { %927 = dma.hbm_to_vmem [thread:$0]  (!%p1345_p11), %s1627_s2, 16, %s1349_s8, [#allocation6]  }
  0x40   : > { %s38_s11 = sadd.s32 1, %s1236_s22  ;;  %s47_s12 = sadd.s32 1, %s1228_s20 }
  0x41   : > { %p40_p13 = scmp.ge.s32.totalorder %s38_s11, 2  ;;  %p54_p6 = scmp.ne.s32.totalorder %s1228_s20, %s1224_s19 }
  0x42   : > { %p55_p10 = scmp.eq.s32.totalorder %s1240_s23, 0  ;;  %p944_p3 = scmp.lt.s32.totalorder %s1240_s23, 2 }
  0x43   : > { %s1657_s11 = smov (%p40_p13, %s38_s11), 0  ;;  %p1640_p7 = scmp.eq.s32.totalorder %s1313_s24, 1 }
  0x44   : > { %p56_p5 = por %p55_p10, %p54_p6  ;;  %s44_s13 = ssub.s32 %s1236_s22, %s1657_s11 }
  0x45   : > { %p1417_p9 = por %p1640_p7, %p54_p6  ;;  %s230_s14 = sand.u32 1, %s1228_s20  }
  0x46   : > { %p45_p12 = scmp.eq.s32.totalorder %s44_s13, 0  ;;  %s777_s8 = sshll.u32 %s230_s14, 5 }
  0x47   : > { %s1641_s6 = scalar_select %p1417_p9, 1, 0 }
  0x48   : > { %s814_s15 = sshll.u32 %s1236_s22, 9  ;;  %s234_s10 = scalar_lea.vmem [#allocation2], %s777_s8 }
  0x49   : > { %s1426_s16 = scalar_select %p45_p12, %s1228_s20, %s47_s12  }
  0x4a   : > { %s1431_s9 = scalar_lea.hbm %s1625_s0, %s814_s15  ;;  %s242_s25 = sshll.u32 %s234_s10, 4  ;;  %s1439_s25 = int_to_ptr.vmem [resolvable:$true] %s242_s25 }
  0x4b   : > { %p1435_p11 = pnand %p944_p3, %p56_p5  ;;  %s1441_s12 = scalar_lea.sflag [#allocation3], %s230_s14 }
  0x4c   : > { %s1064_s13 = scalar_lea.hbm %s1431_s9, 512  ;;  %s1069_s30 = scalar_lea.hbm %s1625_s0, 1024 }
  0x4d   : > { %p1065_p0 = scmp.ne.s32.totalorder %s1431_s9, %s1064_s13  ;;  %p1066_p1 = pneg %p1435_p11 }
  0x4e   : > { %p1070_p6 = scmp.lt.u32.totalorder %s1431_s9, %s1625_s0  ;;  %p1071_p10 = scmp.lt.u32.totalorder %s1069_s30, %s1064_s13 }
  0x4f   : > { %p1067_p2 = pnand %p1066_p1, %p1065_p0  ;;  %p1073_p5 = scmp.lt.u32.totalorder %s1064_s13, %s1431_s9 }
  0x50   : > { %p1072_p3 = por %p1071_p10, %p1070_p6 }
  0x51   : > { %p1068_p13 = pneg %p1067_p2 }
  0x52   : > { %p1074_p7 = por %p1073_p5, %p1072_p3 }
  0x54   : > { %p1075_p12 = pnand %p1074_p7, %p1068_p13 }
  0x56   : > { %1078 = shalt.err (!%p1075_p12)
}
  0x57   : > { %s1079_s14 = scalar_lea.vmem %s1439_s25, 512  ;;  %s1246_s8 = smov [#allocation2]  }
  0x58   : > { %p1080_p0 = scmp.ne.s32.totalorder %s1439_s25, %s1079_s14  ;;  %s1084_s15 = sshll.u32 %s1246_s8, 4  ;;  %s1085_s15 = int_to_ptr.vmem [resolvable:$false] %s1084_s15 }
  0x59   : > { %s1086_s7 = scalar_lea.vmem %s1085_s15, 1024  ;;  %p1087_p4 = scmp.lt.s32.totalorder %s1439_s25, %s1085_s15 }
  0x5a   : > { %p1082_p2 = pnand %p1080_p0, %p1066_p1  ;;  %p1088_p6 = scmp.lt.s32.totalorder %s1086_s7, %s1079_s14 }
  0x5c   : > { %p1083_p9 = pneg %p1082_p2  ;;  %p1089_p10 = por %p1088_p6, %p1087_p4 }
  0x5e   : > { %p1090_p3 = pnand %p1089_p10, %p1083_p9 }
  0x60   : > { %1093 = shalt.err (!%p1090_p3)
}
  0x61   : > { %s1643_s13 = smov 64   ;;  %254 = sbr.rel (%p1334_p8) target bundleno = 417 (0x1a1), region = 32 }
  0x62   : > { %931 = dma.hbm_to_vmem [thread:$0]  (!%p1435_p11), %s1431_s9, 512, %s1439_s25, %s1441_s12, %s1643_s13, %s1643_s13, %s1245_s29  }
  0x63   : > { %s1475_s30 = sand.u32 (!%p1334_p8), 1, %s1224_s19   ;;  %p1644_p4 = scmp.ne.s32.totalorder (!%p1334_p8), %s1636_s26, 0 }
  0x64   : > { %s781_s10 = sshll.u32 (!%p1334_p8), %s1475_s30, 5  ;;  %s257_s14 = scalar_lea.sflag (!%p1334_p8), [#allocation3], %s1475_s30 }
  0x65   : > { %s260_s17 = scalar_lea.vmem (!%p1334_p8), [#allocation2], %s781_s10 }
  0x68   : > { %1203 = dma.done.wait (%p1644_p4), %s257_s14, 512  }
  0x69   : > { %1205 = vsyncadd (%p1644_p4), %s257_s14, 4294966784  ;;  %p1645_p9 = scmp.eq.s32.totalorder %s1313_s24, 0 }
  0x6b   : > { %1207 = dma.done.wait (%p1645_p9), [#allocation6], 592   ;;  %p1646_p8 = pmov %p1645_p9 }
  0x6c   : > { %v1003_v0 = vld [vmem:[#allocation5] sm:$0xff]   ;;  %v1004_v1 = vld [vmem:[#allocation5 + $0x8] sm:$0xff]   ;;  %v1005_v2 = vld [vmem:[#allocation5 + $0x10] sm:$0xff]   ;;  %vm389_vm0 = vcmask 588800   ;;  %vm402_vm1 = vcmask 1043456   ;;  %s290_s25 = scalar_lea.vmem [#allocation8], %s781_s10 }
  0x6d   : > { %1209 = vsyncadd (%p1646_p8), [#allocation6], 4294966704  ;;  %875 = vmatprep.subr.bf16.mxu0 %v1003_v0  ;;  %893 = vmatprep.subr.bf16.mxu1 %v1003_v0  ;;  %v825_v3 = vld [vmem:[%s260_s17] sm:$0xff]   ;;  %v860_v7 = vld [vmem:[%s260_s17 + $0x8] sm:$0xff]   ;;  %s582_s26 = sshll.u32 %s290_s25, 4  ;;  %s823_s28 = sshll.u32 %s1232_s21, 9  ;;  %s1498_s26 = int_to_ptr.vmem [resolvable:$true] %s582_s26 }
  0x6e   : > { %876 = vmatpush3.bf16.msra.mxu0 %v1003_v0  ;;  %898 = vmatpush3.bf16.msra.mxu1 %v1003_v0  ;;  %v826_v4 = vunpack.c.l.bf16 %v825_v3  ;;  %v827_v5 = vunpack.c.h.bf16 %v825_v3  ;;  %v787_v6 = vld [vmem:[#allocation7] ss:$0 sm:$0xff]  ;;  %v861_v8 = vld [vmem:[%s260_s17 + $0x10] sm:$0xff]   ;;  %v830_v9 = vunpack.c.l.bf16 %v860_v7  ;;  %v831_v10 = vunpack.c.h.bf16 %v860_v7  ;;  %v862_v12 = vld [vmem:[%s260_s17 + $0x18] sm:$0xff]   ;;  %s1504_s12 = scalar_lea.hbm %s1628_s3, %s823_s28  ;;  %s558_s8 = scalar_lea.sflag [#allocation4], %s1475_s30 }
  0x6f   : > { %877 = vmatprep.subr.bf16.mxu0 %v1004_v1  ;;  %894 = vmatprep.subr.bf16.mxu1 %v1004_v1  ;;  %v834_v11 = vunpack.c.l.bf16 %v861_v8  ;;  %v835_v15 = vunpack.c.h.bf16 %v861_v8  ;;  %v838_v16 = vunpack.c.l.bf16 %v862_v12  ;;  %v1006_v17 = vld [vmem:[#allocation5 + $0x18] sm:$0xff]   ;;  %v839_v19 = vunpack.c.h.bf16 %v862_v12  ;;  %v1007_v30 = vld [vmem:[#allocation5 + $0x20] ss:$0 sps:$4 sm:$0xff]   ;;  %s1094_s15 = scalar_lea.vmem %s1498_s26, 512  ;;  %p1647_p1 = scmp.ne.s32.totalorder %s1641_s6, 0 }
  0x70   : > { %v333_v13 = vmul.f32 %v826_v4, %v787_v6  ;;  %v334_v14 = vmul.f32 %v827_v5, %v787_v6  ;;  %v335_v22 = vmul.f32 %v830_v9, %v787_v6  ;;  %v336_v24 = vmul.f32 %v831_v10, %v787_v6  ;;  %p1095_p11 = scmp.ne.s32.totalorder %s1498_s26, %s1094_s15  ;;  %s1247_s7 = smov [#allocation8]  }
  0x71   : > { %v337_v18 = vmul.f32 %v834_v11, %v787_v6  ;;  %v338_v23 = vmul.f32 %v835_v15, %v787_v6  ;;  %v339_v26 = vmul.f32 %v838_v16, %v787_v6  ;;  %v340_v27 = vmul.f32 %v839_v19, %v787_v6  ;;  %s1098_s13 = sshll.u32 %s1247_s7, 4  ;;  %s1099_s13 = int_to_ptr.vmem [resolvable:$false] %s1098_s13 }
  0x72   : > { %878 = vmatpush3.bf16.msra.mxu0 %v1004_v1  ;;  %899 = vmatpush3.bf16.msra.mxu1 %v1004_v1  ;;  %v341_v20 = vmax.f32 %v333_v13, 0.0  ;;  %v342_v21 = vmax.f32 %v334_v14, 0.0  ;;  %v343_v32 = vmax.f32 %v335_v22, 0.0  ;;  %v344_v33 = vmax.f32 %v336_v24, 0.0  ;;  %p1096_p13 = pnand %p1095_p11, %p1647_p1  ;;  %s1100_s10 = scalar_lea.vmem %s1099_s13, 1024 }
  0x73   : > { %879 = vmatprep.subr.bf16.mxu0 %v1005_v2  ;;  %895 = vmatprep.subr.bf16.mxu1 %v1005_v2  ;;  %v345_v25 = vmax.f32 %v337_v18, 0.0  ;;  %v346_v29 = vmax.f32 %v338_v23, 0.0  ;;  %v347_v34 = vmax.f32 %v339_v26, 0.0  ;;  %v348_v35 = vmax.f32 %v340_v27, 0.0  ;;  %p1101_p7 = scmp.lt.s32.totalorder %s1498_s26, %s1099_s13  ;;  %p1102_p12 = scmp.lt.s32.totalorder %s1100_s10, %s1094_s15 }
  0x74   : > { %v349_v28 = vpack.c.bf16 %v342_v21, %v341_v20  ;;  %v404_v36 = vsel %vm402_vm1, %v1007_v30, 0  ;;  %v350_v37 = vpack.c.bf16 %v344_v33, %v343_v32  ;;  %p1097_p5 = pneg %p1096_p13 }
  0x75   : > { %v351_v31 = vpack.c.bf16 %v346_v29, %v345_v25  ;;  %v352_v38 = vpack.c.bf16 %v348_v35, %v347_v34  ;;  %p1103_p0 = por %p1102_p12, %p1101_p7 }
  0x76   : > { %880 = vmatpush3.bf16.msra.mxu0 %v1005_v2  ;;  %900 = vmatpush3.bf16.msra.mxu1 %v1005_v2 }
  0x77   : > { %881 = vmatprep.subr.bf16.mxu0 %v1006_v17  ;;  %896 = vmatprep.subr.bf16.mxu1 %v1006_v17  ;;  %p1104_p2 = pnand %p1103_p0, %p1097_p5 }
  0x78   : > { %885 = vmatprep.mubr.msk.bf16.mxu0 %vm389_vm0, %v349_v28  ;;  %889 = vmatprep.mubr.msk.bf16.mxu1 %vm389_vm0, %v351_v31 }
  0x7a   : > { %882 = vmatpush3.bf16.msra.mxu0 %v1006_v17  ;;  %901 = vmatpush3.bf16.msra.mxu1 %v1006_v17 }
  0x7b   : > { %903 = vmatprep.subr.msk.bf16.mxu0 %vm402_vm1, %v1007_v30  ;;  %904 = vmatprep.subr.msk.bf16.mxu1 %vm402_vm1, %v1007_v30 }
  0x7e   : > { %884 = vmatpush3.bf16.msra.mxu0 %v404_v36  ;;  %902 = vmatpush3.bf16.msra.mxu1 %v404_v36 }
  0x81   : > { %886 = vmatmul.mubr.msk.bf16.vlgmr.msra.gmra.mrb[0].mxu0 %vm389_vm0, %v350_v37  ;;  %890 = vmatmul.mubr.msk.bf16.vlgmr.msra.gmra.mrb[0].mxu1 %vm389_vm0, %v352_v38 }
 0x154   : > { %v887_v39 = vpop.f32.mrb[0].mxu0  ;;  %v1495_v40 = vpop.f32.mrb[0].mxu1 }
 0x155   : > { %v440_v41 = vpop.f32.mrb[1].mxu0  ;;  %v456_v42 = vpop.f32.mrb[1].mxu1  ;;  %v536_v54 = vmul.f32 %v887_v39, %v887_v39 }
 0x156   : > { %v888_v43 = vpop.f32.mrb[2].mxu0  ;;  %v892_v44 = vpop.f32.mrb[2].mxu1  ;;  %v534_v45 = vmul.f32 %v440_v41, %v440_v41 }
 0x157   : > { %v848_v46 = vpack.c.bf16 %v888_v43, %v887_v39  ;;  %v443_v47 = vpop.f32.mrb[3].mxu0  ;;  %v858_v48 = vpack.c.bf16 %v892_v44, %v1495_v40  ;;  %v459_v49 = vpop.f32.mrb[3].mxu1 }
 0x158   : > { %v843_v50 = vpack.c.bf16 %v443_v47, %v440_v41  ;;  %v518_v51 = vadd.f32 %v443_v47, %v440_v41  ;;  %v535_v52 = vmul.f32 %v443_v47, %v443_v47  ;;  %v853_v53 = vpack.c.bf16 %v459_v49, %v456_v42 }
 0x159   : > { %863 = vst [vmem:[%s290_s25 + $0x8] sm:$0xff] %v848_v46   ;;  %865 = vst [vmem:[%s290_s25 + $0x18] sm:$0xff] %v858_v48  }
 0x15a   : > { %844 = vst [vmem:[%s290_s25] sm:$0xff] %v843_v50   ;;  %v519_v55 = vadd.f32 %v887_v39, %v518_v51  ;;  %v542_v56 = vadd.f32 %v535_v52, %v534_v45  ;;  %864 = vst [vmem:[%s290_s25 + $0x10] sm:$0xff] %v853_v53  }
 0x15b   : > { %1107 = shalt.err (!%p1104_p2)
}
 0x15c   : > { %s1108_s14 = scalar_lea.hbm %s1504_s12, 512  ;;  %s1112_s28 = scalar_lea.hbm %s1628_s3, 1024 }
 0x15d   : > { %p1109_p6 = scmp.ne.s32.totalorder %s1504_s12, %s1108_s14  ;;  %p1113_p4 = scmp.lt.u32.totalorder %s1504_s12, %s1628_s3 }
 0x15e   : > { %p1114_p9 = scmp.lt.u32.totalorder %s1112_s28, %s1108_s14  ;;  %p1116_p11 = scmp.lt.u32.totalorder %s1108_s14, %s1504_s12 }
 0x15f   : > { %p1110_p10 = pnand %p1109_p6, %p1647_p1 }
 0x160   : > { %p1115_p8 = por %p1114_p9, %p1113_p4 }
 0x161   : > { %p1111_p3 = pneg %p1110_p10 }
 0x162   : > { %p1117_p13 = por %p1116_p11, %p1115_p8 }
 0x164   : > { %p1118_p5 = pnand %p1117_p13, %p1111_p3 }
 0x166   : > { %1121 = shalt.err (!%p1118_p5)
}
 0x167   : > { %s1248_s15 = smov 64   ;;  %s1249_s7 = smov 4   ;;  %v537_v57 = vmul.f32 %v888_v43, %v888_v43  ;;  %v543_v58 = vadd.f32 %v542_v56, %v536_v54  ;;  %v520_v59 = vadd.f32 %v888_v43, %v519_v55  ;;  %v538_v60 = vmul.f32 %v456_v42, %v456_v42 }
 0x168   : > { %915 = dma.vmem_to_hbm [thread:$0]  (%p1647_p1), %s1498_s26, 512, %s1504_s12, %s558_s8, %s1248_s15, %s1248_s15, %s1249_s7   ;;  %v539_v1 = vmul.f32 %v459_v49, %v459_v49  ;;  %v540_v2 = vmul.f32 %v1495_v40, %v1495_v40  ;;  %v541_v5 = vmul.f32 %v892_v44, %v892_v44 }
 0x169   : > { %v521_v61 = vadd.f32 %v520_v59, %v456_v42  ;;  %v544_v62 = vadd.f32 %v543_v58, %v537_v57  ;;  %s785_s26 = sshll.u32 %s1475_s30, 3  ;;  %s562_s12 = sand.u32 1, %s1313_s24  }
 0x16a   : > { %s810_s8 = sshll.u32 %s1232_s21, 7  ;;  %s297_s13 = scalar_lea.vmem [#allocation9], %s785_s26 }
 0x16b   : > { %v545_v63 = vadd.f32 %v544_v62, %v538_v60  ;;  %v522_v0 = vadd.f32 %v521_v61, %v459_v49  ;;  %s598_s10 = sshll.u32 %s297_s13, 4  ;;  %s1536_s14 = scalar_lea.vmem [#allocation11], %s785_s26  ;;  %s1544_s10 = int_to_ptr.vmem [resolvable:$true] %s598_s10 }
 0x16c   : > { %s611_s17 = sshll.u32 %s1536_s14, 4  ;;  %s1542_s28 = scalar_lea.hbm %s1629_s4, %s810_s8  ;;  %s1551_s17 = int_to_ptr.vmem [resolvable:$true] %s611_s17 }
 0x16d   : > { %v523_v3 = vadd.f32 %v1495_v40, %v522_v0  ;;  %v546_v4 = vadd.f32 %v545_v63, %v539_v1  ;;  %s1549_s29 = scalar_lea.hbm %s1630_s5, %s810_s8  ;;  %s1553_s9 = scalar_lea.sflag [#allocation10], %s562_s12 }
 0x16e   : > { %s1122_s15 = scalar_lea.vmem %s1544_s10, 128  ;;  %s1250_s7 = smov [#allocation9]  }
 0x16f   : > { %v524_v6 = vadd.f32 %v892_v44, %v523_v3  ;;  %v547_v7 = vadd.f32 %v546_v4, %v540_v2  ;;  %p1123_p7 = scmp.ne.s32.totalorder %s1544_s10, %s1122_s15  ;;  %s1126_s26 = sshll.u32 %s1250_s7, 4  ;;  %s1127_s26 = int_to_ptr.vmem [resolvable:$false] %s1126_s26 }
 0x170   : > { %s1128_s25 = scalar_lea.vmem %s1127_s26, 256  ;;  %p1129_p2 = scmp.lt.s32.totalorder %s1544_s10, %s1127_s26 }
 0x171   : > { %v525_v8 = vrot.slane %v524_v6, 4  ;;  %v548_v9 = vadd.f32 %v547_v7, %v541_v5  ;;  %p1124_p12 = pnand %p1123_p7, %p1647_p1  ;;  %p1130_p6 = scmp.lt.s32.totalorder %s1128_s25, %s1122_s15 }
 0x173   : > { %v526_v10 = vadd.f32 %v525_v8, %v524_v6  ;;  %v549_v11 = vrot.slane %v548_v9, 4  ;;  %p1125_p0 = pneg %p1124_p12  ;;  %p1131_p10 = por %p1130_p6, %p1129_p2 }
 0x175   : > { %v527_v12 = vrot.slane %v526_v10, 2  ;;  %v550_v13 = vadd.f32 %v549_v11, %v548_v9  ;;  %p1132_p3 = pnand %p1131_p10, %p1125_p0 }
 0x177   : > { %v528_v14 = vadd.f32 %v527_v12, %v526_v10  ;;  %v551_v15 = vrot.slane %v550_v13, 2 }
 0x179   : > { %v529_v16 = vrot.slane %v528_v14, 1  ;;  %v552_v17 = vadd.f32 %v551_v15, %v550_v13 }
 0x17b   : > { %v530_v18 = vadd.f32 %v529_v16, %v528_v14  ;;  %v553_v19 = vrot.slane %v552_v17, 1 }
 0x17d   : > { %v554_v20 = vadd.f32 %v553_v19, %v552_v17  ;;  %532 = vst [vmem:[%s297_s13] sm:$0xff] %v530_v18 }
 0x17e   : > { %1135 = shalt.err (!%p1132_p3)
}
 0x17f   : > { %s1136_s12 = scalar_lea.hbm %s1542_s28, 128  ;;  %s1140_s30 = scalar_lea.hbm %s1629_s4, 256 }
 0x180   : > { %p1137_p4 = scmp.ne.s32.totalorder %s1542_s28, %s1136_s12  ;;  %p1141_p11 = scmp.lt.u32.totalorder %s1542_s28, %s1629_s4 }
 0x181   : > { %p1142_p13 = scmp.lt.u32.totalorder %s1140_s30, %s1136_s12  ;;  %p1144_p7 = scmp.lt.u32.totalorder %s1136_s12, %s1542_s28 }
 0x182   : > { %p1138_p9 = pnand %p1137_p4, %p1647_p1 }
 0x183   : > { %p1143_p5 = por %p1142_p13, %p1141_p11 }
 0x184   : > { %p1139_p8 = pneg %p1138_p9 }
 0x185   : > { %p1145_p12 = por %p1144_p7, %p1143_p5 }
 0x187   : > { %p1146_p0 = pnand %p1145_p12, %p1139_p8 }
 0x189   : > { %1149 = shalt.err (!%p1146_p0)
}
 0x18a   : > { %916 = dma.vmem_to_hbm [thread:$0]  (%p1647_p1), %s1544_s10, 128, %s1542_s28, %s1553_s9   ;;  %556 = vst [vmem:[%s1536_s14] sm:$0xff] %v554_v20 }
 0x18b   : > { %s1150_s15 = scalar_lea.vmem %s1551_s17, 128  ;;  %s1251_s7 = smov [#allocation11]  }
 0x18c   : > { %p1151_p2 = scmp.ne.s32.totalorder %s1551_s17, %s1150_s15  ;;  %s1154_s26 = sshll.u32 %s1251_s7, 4  ;;  %s1155_s26 = int_to_ptr.vmem [resolvable:$false] %s1154_s26 }
 0x18d   : > { %s1156_s25 = scalar_lea.vmem %s1155_s26, 256  ;;  %p1157_p3 = scmp.lt.s32.totalorder %s1551_s17, %s1155_s26 }
 0x18e   : > { %p1152_p6 = pnand %p1151_p2, %p1647_p1  ;;  %p1158_p4 = scmp.lt.s32.totalorder %s1156_s25, %s1150_s15 }
 0x190   : > { %p1153_p10 = pneg %p1152_p6  ;;  %p1159_p9 = por %p1158_p4, %p1157_p3 }
 0x192   : > { %p1160_p8 = pnand %p1159_p9, %p1153_p10 }
 0x194   : > { %1163 = shalt.err (!%p1160_p8)
}
 0x195   : > { %s1164_s10 = scalar_lea.hbm %s1549_s29, 128  ;;  %s1168_s12 = scalar_lea.hbm %s1630_s5, 256 }
 0x196   : > { %p1165_p11 = scmp.ne.s32.totalorder %s1549_s29, %s1164_s10  ;;  %p1169_p7 = scmp.lt.u32.totalorder %s1549_s29, %s1630_s5 }
 0x197   : > { %p1170_p12 = scmp.lt.u32.totalorder %s1168_s12, %s1164_s10  ;;  %p1172_p2 = scmp.lt.u32.totalorder %s1164_s10, %s1549_s29 }
 0x198   : > { %p1166_p13 = pnand %p1165_p11, %p1647_p1 }
 0x199   : > { %p1171_p0 = por %p1170_p12, %p1169_p7 }
 0x19a   : > { %p1167_p5 = pneg %p1166_p13 }
 0x19b   : > { %p1173_p6 = por %p1172_p2, %p1171_p0 }
 0x19d   : > { %p1174_p10 = pnand %p1173_p6, %p1167_p5 }
 0x19f   : > { %1177 = shalt.err (!%p1174_p10)
}
 0x1a0   : > { %917 = dma.vmem_to_hbm [thread:$0]  (%p1647_p1), %s1551_s17, 128, %s1549_s29, %s1553_s9  }
 0x1a1 PF: > { %s623_s30 = sand.u32 1, %s1220_s18   ;;  %p1648_p3 = scmp.ne.s32.totalorder %s1637_s27, 0 }
 0x1a2   : > { %p1649_p4 = scmp.ge.s32.totalorder %s1240_s23, 2  ;;  %s624_s21 = scalar_lea.sflag [#allocation4], %s623_s30 }
 0x1a4   : > { %p933_p9 = pnand %p1649_p4, %p1648_p3 }
 0x1a6   : > { %1211 = dma.done.wait (!%p933_p9), %s624_s21, 512  }
 0x1a7   : > { %1213 = vsyncadd (!%p933_p9), %s624_s21, 4294966784  ;;  %s1650_s24 = sadd.s32 4294967294, %s1240_s23  }
 0x1a8   : > { %s632_s15 = sand.u32 1, %s1650_s24  }
 0x1a9   : > { %s633_s7 = scalar_lea.sflag [#allocation10], %s632_s15 }
 0x1aa   : > { %1215 = dma.done.wait (!%p933_p9), %s633_s7, 256  }
 0x1ab   : > { %1217 = vsyncadd (!%p933_p9), %s633_s7, 4294967040  ;;  %s26_s23 = sadd.s32 1, %s1240_s23   ;;  %s1651_s18 = smov %s1224_s19 }
 0x1ac   : > { %p23_p1 = scmp.ge.s32.totalorder %s26_s23, 4   ;;  %s1652_s19 = smov %s1228_s20 }
 0x1ad   : > { %s1653_s20 = smov %s1426_s16  ;;  %s1654_s21 = smov %s1236_s22 }
 0x1ae   : > { %s1655_s22 = smov %s1657_s11  ;;  %25 = sbr.rel (!%p23_p1) target bundleno = 9 (0x9), region = 121 }
 0x1b5   :  { %647 = vsyncpa [#allocation3], 1 }
 0x1b6   :  { %649 = vsyncpa [#allocation3 + $0x1], 1 }
 0x1b7   :  { %650 = vsyncpa [#allocation6], 1 }
 0x1b8   :  { %651 = vsyncpa [#allocation4], 1 }
 0x1b9   :  { %653 = vsyncpa [#allocation4 + $0x1], 1 }
 0x1ba   :  { %654 = vsyncpa [#allocation10], 1 }
 0x1bb   :  { %656 = vsyncpa [#allocation10 + $0x1], 1 }

// kernel: basic_block_forward.5
= control target key start
LH: loop header
LB: loop body
LE: loop exit
PB: predicated region body
PF: predicated region fallthrough
CT: control target
= control target key end

     0   :  { %s1493_s0 = inlined_call_operand.hbm [shape: bf16[128,128], index: 0, kind: input, shape index: {}]   ;;  %s1494_s1 = inlined_call_operand.hbm [shape: bf16[128,128], index: 1, kind: input, shape index: {}]   ;;  %s1495_s2 = inlined_call_operand.hbm [shape: f32[1,128], index: 2, kind: input, shape index: {}]   ;;  %s1496_s3 = inlined_call_operand.hbm [shape: f32[1,128], index: 3, kind: input, shape index: {}]   ;;  %s1497_s4 = inlined_call_operand.hbm [shape: f32[1,128], index: 4, kind: input, shape index: {}]   ;;  %s1498_s5 = inlined_call_operand.hbm [shape: f32[1,128], index: 5, kind: input, shape index: {}]   ;;  %s1499_s6 = inlined_call_operand.hbm [shape: f32[128,128], index: 6, kind: output, shape index: {}]  }
   0x1   :  { %1503 = sst [smem:[#allocation20_spill]] %s1493_s0 }
   0x2   :  { %1504 = sst [smem:[#allocation21_spill]] %s1495_s2 }
   0x3   :  { %1505 = sst [smem:[#allocation22_spill]] %s1496_s3 }
   0x4   :  { %11 = vsyncpa [#allocation3], 0 }
   0x5   :  { %13 = vsyncpa [#allocation3 + $0x1], 0 }
   0x6   :  { %14 = vsyncpa [#allocation6], 0 }
   0x7   :  { %16 = vsyncpa [#allocation6 + $0x1], 0 }
   0x8   :  { %17 = vsyncpa [#allocation9], 0 }
   0x9   :  { %18 = vsyncpa [#allocation12], 0 }
   0xa   :  { %19 = vsyncpa [#allocation4], 0 }
   0xb   :  { %21 = vsyncpa [#allocation4 + $0x1], 0  ;;  %s1096_s21 = smov 0   ;;  %s1098_s22 = smov 0  }
   0xc   :  { %s1100_s23 = smov 0   ;;  %s1102_s24 = smov 0  }
   0xd LB: > { %s1117_s25 = sadd.s32 4294967295, %s1048_s24   ;;  %s627_s26 = sadd.s32 4294967294, %s1048_s24   ;;  %s1048_s24 = sphi %s1102_s24, %s1530_s24   ;;  %s1044_s23 = sphi %s1100_s23, %s1529_s23   ;;  %s1040_s22 = sphi %s1098_s22, %s1528_s22   ;;  %s1036_s21 = sphi %s1096_s21, %s1527_s21  }
   0xe   : > { %p47_p0 = scmp.ne.s32.totalorder %s1040_s22, %s1036_s21  ;;  %p1500_p1 = scmp.eq.s32.totalorder %s1117_s25, 0 }
   0xf   : > { %p187_p3 = scmp.eq.s32.totalorder %s627_s26, 1  ;;  %p628_p5 = scmp.ge.s32.totalorder %s1048_s24, 1 }
  0x10   : > { %p1126_p4 = por %p1500_p1, %p47_p0  ;;  %p194_p7 = scmp.lt.s32.totalorder %s1048_s24, 3 }
  0x11   : > { %p1131_p6 = por %p187_p3, %p47_p0  ;;  %s1050_s30 = smov [#allocation7]  }
  0x12   : > { %s1506_s27 = scalar_select %p1126_p4, 1, 0 }
  0x13   : > { %s1507_s28 = scalar_select %p1131_p6, 1, 0 }
  0x14   : > { %p1136_p8 = pnand %p628_p5, %p194_p7  ;;  %s207_s7 = sshll.u32 %s1050_s30, 4  ;;  %s208_s7 = int_to_ptr.vmem [resolvable:$true] %s207_s7 }
  0x15   : > { %s1051_s8 = smov [#allocation8]   ;;  %s1052_s11 = smov [#allocation10]  }
  0x16   : > { %s1508_s29 = scalar_select %p1136_p8, 1, 0 }
  0x17   : > { %p720_p10 = pneg %p1136_p8  ;;  %s218_s9 = sshll.u32 %s1051_s8, 4  ;;  %s1149_s9 = int_to_ptr.vmem [resolvable:$true] %s218_s9 }
  0x18   : > { %s229_s12 = sshll.u32 %s1052_s11, 4  ;;  %s1510_s2 = sld [smem:[#allocation21_spill]]  ;;  %s1151_s12 = int_to_ptr.vmem [resolvable:$true] %s229_s12 }
  0x19   : > { %p1145_p11 = pnand %p720_p10, %p1500_p1 }
  0x1b   : > { %p1161_p13 = pneg %p1145_p11 }
  0x1e   : > { %s794_s15 = scalar_lea.hbm %s1510_s2, 16 }
  0x1f   : > { %p795_p12 = scmp.ne.s32.totalorder %s1510_s2, %s794_s15  ;;  %p801_p5 = scmp.lt.u32.totalorder %s794_s15, %s1510_s2 }
  0x21   : > { %p797_p0 = pnand %p1161_p13, %p795_p12 }
  0x23   : > { %p798_p3 = pneg %p797_p0 }
  0x25   : > { %p803_p7 = pnand %p801_p5, %p798_p3 }
  0x27   : > { %806 = shalt.err (!%p803_p7)
}
  0x28   : > { %s807_s26 = scalar_lea.vmem %s208_s7, 16  ;;  %s814_s30 = scalar_lea.vmem %s208_s7, 32 }
  0x29   : > { %p808_p10 = scmp.ne.s32.totalorder %s208_s7, %s807_s26  ;;  %p815_p2 = scmp.lt.s32.totalorder %s208_s7, %s208_s7 }
  0x2a   : > { %p816_p6 = scmp.lt.s32.totalorder %s814_s30, %s807_s26 }
  0x2b   : > { %p810_p9 = pnand %p808_p10, %p1161_p13 }
  0x2c   : > { %p817_p4 = por %p816_p6, %p815_p2 }
  0x2d   : > { %p811_p1 = pneg %p810_p9 }
  0x2f   : > { %p818_p8 = pnand %p817_p4, %p811_p1 }
  0x31   : > { %821 = shalt.err (!%p818_p8)
}
  0x32   : > { %723 = dma.hbm_to_vmem [thread:$0]  (!%p1145_p11), %s1510_s2, 16, %s208_s7, [#allocation6]  }
  0x33   : > { %s1512_s3 = sld [smem:[#allocation22_spill]] }
  0x39   : > { %s822_s15 = scalar_lea.hbm %s1512_s3, 16 }
  0x3a   : > { %p823_p9 = scmp.ne.s32.totalorder %s1512_s3, %s822_s15  ;;  %p829_p1 = scmp.lt.u32.totalorder %s822_s15, %s1512_s3 }
  0x3c   : > { %p825_p12 = pnand %p823_p9, %p1161_p13 }
  0x3e   : > { %p826_p2 = pneg %p825_p12 }
  0x40   : > { %p831_p4 = pnand %p829_p1, %p826_p2 }
  0x42   : > { %834 = shalt.err (!%p831_p4)
}
  0x43   : > { %s835_s7 = scalar_lea.vmem %s1149_s9, 16  ;;  %s842_s26 = scalar_lea.vmem %s1149_s9, 32 }
  0x44   : > { %p836_p6 = scmp.ne.s32.totalorder %s1149_s9, %s835_s7  ;;  %p843_p3 = scmp.lt.s32.totalorder %s1149_s9, %s1149_s9 }
  0x45   : > { %p844_p5 = scmp.lt.s32.totalorder %s842_s26, %s835_s7 }
  0x46   : > { %p838_p8 = pnand %p836_p6, %p1161_p13 }
  0x47   : > { %p845_p7 = por %p844_p5, %p843_p3 }
  0x48   : > { %p839_p0 = pneg %p838_p8 }
  0x4a   : > { %p846_p10 = pnand %p845_p7, %p839_p0 }
  0x4c   : > { %849 = shalt.err (!%p846_p10)
}
  0x4d   : > { %726 = dma.hbm_to_vmem [thread:$0]  (!%p1145_p11), %s1512_s3, 16, %s1149_s9, [#allocation9]  }
  0x4e   : > { %s850_s14 = scalar_lea.hbm %s1497_s4, 16 }
  0x4f   : > { %p851_p9 = scmp.ne.s32.totalorder %s1497_s4, %s850_s14  ;;  %p857_p1 = scmp.lt.u32.totalorder %s850_s14, %s1497_s4 }
  0x51   : > { %p853_p12 = pnand %p851_p9, %p1161_p13 }
  0x53   : > { %p854_p2 = pneg %p853_p12 }
  0x55   : > { %p859_p4 = pnand %p857_p1, %p854_p2 }
  0x57   : > { %862 = shalt.err (!%p859_p4)
}
  0x58   : > { %s863_s9 = scalar_lea.vmem %s1151_s12, 16  ;;  %s870_s20 = scalar_lea.vmem %s1151_s12, 32 }
  0x59   : > { %p864_p6 = scmp.ne.s32.totalorder %s1151_s12, %s863_s9  ;;  %p871_p3 = scmp.lt.s32.totalorder %s1151_s12, %s1151_s12 }
  0x5a   : > { %p872_p5 = scmp.lt.s32.totalorder %s870_s20, %s863_s9 }
  0x5b   : > { %p866_p8 = pnand %p864_p6, %p1161_p13 }
  0x5c   : > { %p873_p7 = por %p872_p5, %p871_p3 }
  0x5d   : > { %p867_p0 = pneg %p866_p8 }
  0x5f   : > { %p874_p10 = pnand %p873_p7, %p867_p0 }
  0x61   : > { %877 = shalt.err (!%p874_p10)
}
  0x62   : > { %729 = dma.hbm_to_vmem [thread:$0]  (!%p1145_p11), %s1497_s4, 16, %s1151_s12, [#allocation9]  }
  0x63   : > { %s1053_s30 = smov [#allocation11]   ;;  %s878_s14 = scalar_lea.hbm %s1498_s5, 16 }
  0x64   : > { %s240_s8 = sshll.u32 %s1053_s30, 4  ;;  %p879_p9 = scmp.ne.s32.totalorder %s1498_s5, %s878_s14  ;;  %s241_s8 = int_to_ptr.vmem [resolvable:$true] %s240_s8 }
  0x65   : > { %p885_p1 = scmp.lt.u32.totalorder %s878_s14, %s1498_s5 }
  0x66   : > { %p881_p12 = pnand %p879_p9, %p1161_p13 }
  0x68   : > { %p882_p2 = pneg %p881_p12 }
  0x6a   : > { %p887_p4 = pnand %p885_p1, %p882_p2 }
  0x6c   : > { %890 = shalt.err (!%p887_p4)
}
  0x6d   : > { %s891_s12 = scalar_lea.vmem %s241_s8, 16  ;;  %s898_s9 = scalar_lea.vmem %s241_s8, 32 }
  0x6e   : > { %p892_p6 = scmp.ne.s32.totalorder %s241_s8, %s891_s12  ;;  %p899_p3 = scmp.lt.s32.totalorder %s241_s8, %s241_s8 }
  0x6f   : > { %p900_p5 = scmp.lt.s32.totalorder %s898_s9, %s891_s12 }
  0x70   : > { %p894_p8 = pnand %p892_p6, %p1161_p13 }
  0x71   : > { %p901_p7 = por %p900_p5, %p899_p3 }
  0x72   : > { %p895_p0 = pneg %p894_p8 }
  0x74   : > { %p902_p10 = pnand %p901_p7, %p895_p0 }
  0x76   : > { %905 = shalt.err (!%p902_p10)
}
  0x77   : > { %732 = dma.hbm_to_vmem [thread:$0]  (!%p1145_p11), %s1498_s5, 16, %s241_s8, [#allocation12]  }
  0x78   : > { %s1244_s18 = sadd.s32 1, %s1048_s24   ;;  %s34_s10 = sadd.s32 1, %s1044_s23 }
  0x79   : > { %s31_s26 = ssub.s32 %s1048_s24, %s1244_s18  ;;  %p41_p13 = scmp.ne.s32.totalorder %s1044_s23, %s1040_s22 }
  0x7a   : > { %p32_p9 = scmp.eq.s32.totalorder %s31_s26, 0  ;;  %p42_p12 = scmp.eq.s32.totalorder %s1048_s24, 0 }
  0x7b   : > { %p1513_p2 = scmp.eq.s32.totalorder %s1117_s25, 1  ;;  %p748_p4 = scmp.lt.s32.totalorder %s1048_s24, 2 }
  0x7c   : > { %s1260_s11 = scalar_select %p32_p9, %s1044_s23, %s34_s10  }
  0x7d   : > { %p1254_p1 = por %p1513_p2, %p41_p13  ;;  %p43_p6 = por %p42_p12, %p41_p13 }
  0x7e   : > { %s251_s13 = sand.u32 1, %s1044_s23   ;;  %s657_s8 = sshll.u32 %s1048_s24, 9 }
  0x7f   : > { %s1263_s14 = sshll.u32 %s251_s13, 5  ;;  %s1515_s0 = sld [smem:[#allocation20_spill]] }
  0x80   : > { %s255_s19 = scalar_lea.vmem [#allocation2], %s1263_s14  ;;  %p1276_p11 = pnand %p748_p4, %p43_p6 }
  0x81   : > { %s262_s12 = sshll.u32 %s255_s19, 4  ;;  %s1280_s20 = scalar_lea.sflag [#allocation3], %s251_s13  ;;  %s1274_s12 = int_to_ptr.vmem [resolvable:$true] %s262_s12 }
  0x82   : > { %p908_p0 = pneg %p1276_p11 }
  0x85   : > { %s1271_s17 = scalar_lea.hbm %s1515_s0, %s657_s8  ;;  %s911_s15 = scalar_lea.hbm %s1515_s0, 1024 }
  0x86   : > { %s906_s7 = scalar_lea.hbm %s1271_s17, 512  ;;  %p912_p7 = scmp.lt.u32.totalorder %s1271_s17, %s1515_s0 }
  0x87   : > { %p907_p8 = scmp.ne.s32.totalorder %s1271_s17, %s906_s7  ;;  %p913_p10 = scmp.lt.u32.totalorder %s911_s15, %s906_s7 }
  0x88   : > { %p915_p9 = scmp.lt.u32.totalorder %s906_s7, %s1271_s17 }
  0x89   : > { %p909_p3 = pnand %p908_p0, %p907_p8  ;;  %p914_p13 = por %p913_p10, %p912_p7 }
  0x8b   : > { %p910_p5 = pneg %p909_p3  ;;  %p916_p12 = por %p915_p9, %p914_p13 }
  0x8d   : > { %p917_p2 = pnand %p916_p12, %p910_p5 }
  0x8f   : > { %920 = shalt.err (!%p917_p2)
}
  0x90   : > { %s921_s13 = scalar_lea.vmem %s1274_s12, 512  ;;  %s1054_s10 = smov [#allocation2]  }
  0x91   : > { %p922_p4 = scmp.ne.s32.totalorder %s1274_s12, %s921_s13  ;;  %s926_s26 = sshll.u32 %s1054_s10, 4  ;;  %s927_s26 = int_to_ptr.vmem [resolvable:$false] %s926_s26 }
  0x92   : > { %s928_s16 = scalar_lea.vmem %s927_s26, 1024  ;;  %p929_p3 = scmp.lt.s32.totalorder %s1274_s12, %s927_s26 }
  0x93   : > { %p924_p6 = pnand %p922_p4, %p908_p0  ;;  %p930_p7 = scmp.lt.s32.totalorder %s928_s16, %s921_s13 }
  0x95   : > { %p925_p8 = pneg %p924_p6  ;;  %p931_p10 = por %p930_p7, %p929_p3 }
  0x97   : > { %p932_p13 = pnand %p931_p10, %p925_p8 }
  0x99   : > { %935 = shalt.err (!%p932_p13)
}
  0x9a   : > { %s1055_s7 = smov 64   ;;  %s1056_s15 = smov 4  }
  0x9b   : > { %736 = dma.hbm_to_vmem [thread:$0]  (!%p1276_p11), %s1271_s17, 512, %s1274_s12, %s1280_s20, %s1055_s7, %s1055_s7, %s1056_s15  }
  0x9c   : > { %s1316_s10 = scalar_lea.hbm %s1494_s1, %s657_s8  ;;  %s276_s26 = scalar_lea.vmem [#allocation5], %s1263_s14 }
  0x9d   : > { %s283_s16 = sshll.u32 %s276_s26, 4  ;;  %s272_s0 = sand.u32 1, %s1048_s24   ;;  %s1319_s16 = int_to_ptr.vmem [resolvable:$true] %s283_s16 }
  0x9e   : > { %s1322_s2 = scalar_lea.sflag [#allocation6], %s272_s0  ;;  %s936_s3 = scalar_lea.hbm %s1316_s10, 512 }
  0x9f   : > { %p937_p5 = scmp.ne.s32.totalorder %s1316_s10, %s936_s3  ;;  %s941_s12 = scalar_lea.hbm %s1494_s1, 1024 }
  0xa0   : > { %p942_p2 = scmp.lt.u32.totalorder %s1316_s10, %s1494_s1  ;;  %p943_p4 = scmp.lt.u32.totalorder %s941_s12, %s936_s3 }
  0xa1   : > { %p939_p9 = pnand %p937_p5, %p908_p0  ;;  %p945_p8 = scmp.lt.u32.totalorder %s936_s3, %s1316_s10 }
  0xa2   : > { %p944_p6 = por %p943_p4, %p942_p2 }
  0xa3   : > { %p940_p12 = pneg %p939_p9 }
  0xa4   : > { %p946_p3 = por %p945_p8, %p944_p6 }
  0xa6   : > { %p947_p7 = pnand %p946_p3, %p940_p12 }
  0xa8   : > { %950 = shalt.err (!%p947_p7)
}
  0xa9   : > { %s951_s0 = scalar_lea.vmem %s1319_s16, 512  ;;  %s1057_s14 = smov [#allocation5]  }
  0xaa   : > { %p952_p10 = scmp.ne.s32.totalorder %s1319_s16, %s951_s0  ;;  %s956_s13 = sshll.u32 %s1057_s14, 4  ;;  %s957_s13 = int_to_ptr.vmem [resolvable:$false] %s956_s13 }
  0xab   : > { %s958_s26 = scalar_lea.vmem %s957_s13, 1024  ;;  %p959_p9 = scmp.lt.s32.totalorder %s1319_s16, %s957_s13 }
  0xac   : > { %p954_p13 = pnand %p952_p10, %p908_p0  ;;  %p960_p2 = scmp.lt.s32.totalorder %s958_s26, %s951_s0 }
  0xae   : > { %p955_p5 = pneg %p954_p13  ;;  %p961_p4 = por %p960_p2, %p959_p9 }
  0xb0   : > { %p962_p6 = pnand %p961_p4, %p955_p5 }
  0xb2   : > { %965 = shalt.err (!%p962_p6)
}
  0xb3   : > { %739 = dma.hbm_to_vmem [thread:$0]  (!%p1276_p11), %s1316_s10, 512, %s1319_s16, %s1322_s2, %s1055_s7, %s1055_s7, %s1056_s15  }
  0xb4   : > { %p1517_p0 = scmp.ne.s32.totalorder %s1508_s29, 0 }
  0xb5   : > { %s1354_s3 = sand.u32 (!%p1517_p0), 1, %s1040_s22   ;;  %p1518_p12 = scmp.ne.s32.totalorder (!%p1517_p0), %s1506_s27, 0 }
  0xb6   : > { %295 = sbr.rel (%p1517_p0) target bundleno = 241 (0xf1), region = 44  ;;  %s641_s17 = sshll.u32 (!%p1517_p0), %s1354_s3, 5 }
  0xb7   : > { %s298_s8 = scalar_lea.sflag (!%p1517_p0), [#allocation3], %s1354_s3  ;;  %s1358_s12 = scalar_lea.vmem (!%p1517_p0), [#allocation2], %s641_s17 }
  0xbd   : > { %1011 = dma.done.wait (%p1518_p12), %s298_s8, 512  }
  0xbe   : > { %1013 = vsyncadd (%p1518_p12), %s298_s8, 4294966784  ;;  %s306_s2 = sand.u32 1, %s1117_s25   ;;  %s1365_s9 = scalar_lea.vmem [#allocation5], %s641_s17 }
  0xbf   : > { %s307_s29 = scalar_lea.sflag [#allocation6], %s306_s2 }
  0xc0   : > { %1015 = dma.done.wait (%p1518_p12), %s307_s29, 512  }
  0xc1   : > { %1017 = vsyncadd (%p1518_p12), %s307_s29, 4294966784  ;;  %p1519_p11 = scmp.eq.s32.totalorder %s1117_s25, 0 }
  0xc3   : > { %1019 = dma.done.wait (%p1519_p11), [#allocation6], 16   ;;  %p1520_p8 = pmov %p1519_p11 }
  0xc5   : > { %1021 = vsyncadd (%p1520_p8), [#allocation6], 4294967280  ;;  %p1521_p3 = pmov %p1520_p8 }
  0xc7   : > { %1023 = dma.done.wait (%p1521_p3), [#allocation9], 32   ;;  %p1522_p7 = pmov %p1521_p3 }
  0xc8   : > { %p1523_p10 = pmov %p1521_p3 }
  0xc9   : > { %1025 = vsyncadd (%p1522_p7), [#allocation9], 4294967264 }
  0xca   : > { %1027 = dma.done.wait (%p1523_p10), [#allocation12], 16   ;;  %p1524_p13 = pmov %p1521_p3 }
  0xcb   : > { %v661_v0 = vld [vmem:[%s1358_s12] sm:$0xff]   ;;  %v692_v9 = vld [vmem:[%s1358_s12 + $0x8] sm:$0xff]   ;;  %v693_v20 = vld [vmem:[%s1358_s12 + $0x10] sm:$0xff]   ;;  %s647_s27 = sshll.u32 %s1354_s3, 6  ;;  %s659_s10 = sshll.u32 %s1117_s25, 10 }
  0xcc   : > { %1029 = vsyncadd (%p1524_p13), [#allocation12], 4294967280  ;;  %v1384_v1 = vld [vmem:[#allocation7] ss:$0 sm:$0xff]  ;;  %v662_v2 = vunpack.c.l.bf16 %v661_v0  ;;  %v1387_v4 = vld [vmem:[#allocation10] ss:$0 sm:$0xff]  ;;  %v663_v5 = vunpack.c.h.bf16 %v661_v0  ;;  %v666_v14 = vunpack.c.l.bf16 %v692_v9  ;;  %v667_v18 = vunpack.c.h.bf16 %v692_v9  ;;  %s1447_s19 = scalar_lea.hbm %s1499_s6, %s659_s10 }
  0xcd   : > { %v677_v3 = vld [vmem:[%s1365_s9] sm:$0xff]   ;;  %v695_v10 = vld [vmem:[%s1365_s9 + $0x8] sm:$0xff]   ;;  %v696_v21 = vld [vmem:[%s1365_s9 + $0x10] sm:$0xff]   ;;  %v670_v32 = vunpack.c.l.bf16 %v693_v20  ;;  %v671_v41 = vunpack.c.h.bf16 %v693_v20  ;;  %s1421_s7 = scalar_lea.vmem [#allocation13], %s647_s27  ;;  %s480_s0 = scalar_lea.sflag [#allocation4], %s1354_s3 }
  0xce   : > { %v1389_v6 = vld [vmem:[#allocation8] ss:$0 sm:$0xff]  ;;  %v678_v7 = vunpack.c.l.bf16 %v677_v3  ;;  %v679_v8 = vunpack.c.h.bf16 %v677_v3  ;;  %v386_v11 = vmul.f32 %v662_v2, %v1384_v1  ;;  %v1394_v12 = vld [vmem:[#allocation11] ss:$0 sm:$0xff]  ;;  %v387_v13 = vmul.f32 %v663_v5, %v1384_v1  ;;  %v694_v42 = vld [vmem:[%s1358_s12 + $0x18] sm:$0xff]   ;;  %s493_s15 = sshll.u32 %s1421_s7, 4  ;;  %s1441_s15 = int_to_ptr.vmem [resolvable:$true] %s493_s15 }
  0xcf   : > { %v682_v15 = vunpack.c.l.bf16 %v695_v10  ;;  %v683_v19 = vunpack.c.h.bf16 %v695_v10  ;;  %v388_v24 = vmul.f32 %v666_v14, %v1384_v1  ;;  %v389_v28 = vmul.f32 %v667_v18, %v1384_v1  ;;  %v697_v43 = vld [vmem:[%s1365_s9 + $0x18] sm:$0xff]   ;;  %s966_s25 = scalar_lea.vmem %s1441_s15, 1024  ;;  %s1058_s14 = smov [#allocation13]  }
  0xd0   : > { %v432_v16 = vmul.f32 %v678_v7, %v1387_v4  ;;  %v433_v17 = vmul.f32 %v679_v8, %v1387_v4  ;;  %v401_v22 = vadd.f32 %v1389_v6, %v386_v11  ;;  %v402_v23 = vadd.f32 %v1389_v6, %v387_v13  ;;  %p967_p5 = scmp.ne.s32.totalorder %s1441_s15, %s966_s25  ;;  %s970_s13 = sshll.u32 %s1058_s14, 4  ;;  %s971_s13 = int_to_ptr.vmem [resolvable:$false] %s970_s13 }
  0xd1   : > { %v434_v25 = vmul.f32 %v682_v15, %v1387_v4  ;;  %v435_v29 = vmul.f32 %v683_v19, %v1387_v4  ;;  %v403_v30 = vadd.f32 %v1389_v6, %v388_v24  ;;  %v686_v33 = vunpack.c.l.bf16 %v696_v21  ;;  %s972_s26 = scalar_lea.vmem %s971_s13, 2048  ;;  %p973_p4 = scmp.lt.s32.totalorder %s1441_s15, %s971_s13 }
  0xd2   : > { %v447_v26 = vadd.f32 %v1394_v12, %v432_v16  ;;  %v448_v27 = vadd.f32 %v1394_v12, %v433_v17  ;;  %v404_v36 = vadd.f32 %v1389_v6, %v389_v28  ;;  %v390_v39 = vmul.f32 %v670_v32, %v1384_v1  ;;  %p968_p9 = pnand %p967_p5, %p1254_p1  ;;  %p974_p6 = scmp.lt.s32.totalorder %s972_s26, %s966_s25 }
  0xd3   : > { %v449_v31 = vadd.f32 %v1394_v12, %v434_v25  ;;  %v450_v37 = vadd.f32 %v1394_v12, %v435_v29  ;;  %v436_v40 = vmul.f32 %v686_v33, %v1387_v4  ;;  %v687_v47 = vunpack.c.h.bf16 %v696_v21 }
  0xd4   : > { %v455_v34 = vadd.f32 %v447_v26, %v401_v22  ;;  %v456_v35 = vadd.f32 %v448_v27, %v402_v23  ;;  %v405_v49 = vadd.f32 %v1389_v6, %v390_v39  ;;  %v391_v51 = vmul.f32 %v671_v41, %v1384_v1  ;;  %p969_p2 = pneg %p968_p9  ;;  %p975_p0 = por %p974_p6, %p973_p4 }
  0xd5   : > { %v457_v38 = vadd.f32 %v449_v31, %v403_v30  ;;  %v458_v46 = vadd.f32 %v450_v37, %v404_v36  ;;  %v451_v50 = vadd.f32 %v1394_v12, %v436_v40  ;;  %v437_v53 = vmul.f32 %v687_v47, %v1387_v4 }
  0xd6   : > { %v463_v44 = vmax.f32 %v455_v34, 0.0  ;;  %v464_v45 = vmax.f32 %v456_v35, 0.0  ;;  %v674_v54 = vunpack.c.l.bf16 %v694_v42  ;;  %v690_v55 = vunpack.c.l.bf16 %v697_v43  ;;  %p976_p12 = pnand %p975_p0, %p969_p2 }
  0xd7   : > { %v465_v48 = vmax.f32 %v457_v38, 0.0  ;;  %v466_v52 = vmax.f32 %v458_v46, 0.0  ;;  %v459_v56 = vadd.f32 %v451_v50, %v405_v49  ;;  %v406_v57 = vadd.f32 %v1389_v6, %v391_v51 }
  0xd8   : > { %471 = vst [vmem:[%s1421_s7] sm:$0xff] %v463_v44  ;;  %472 = vst [vmem:[%s1421_s7 + $0x8] sm:$0xff] %v464_v45  ;;  %v675_v58 = vunpack.c.h.bf16 %v694_v42  ;;  %v691_v59 = vunpack.c.h.bf16 %v697_v43  ;;  %v452_v60 = vadd.f32 %v1394_v12, %v437_v53  ;;  %v392_v61 = vmul.f32 %v674_v54, %v1384_v1 }
  0xd9   : > { %473 = vst [vmem:[%s1421_s7 + $0x10] sm:$0xff] %v465_v48  ;;  %474 = vst [vmem:[%s1421_s7 + $0x18] sm:$0xff] %v466_v52  ;;  %v438_v62 = vmul.f32 %v690_v55, %v1387_v4  ;;  %v467_v63 = vmax.f32 %v459_v56, 0.0 }
  0xda   : > { %v393_v0 = vmul.f32 %v675_v58, %v1384_v1  ;;  %v439_v2 = vmul.f32 %v691_v59, %v1387_v4  ;;  %v460_v3 = vadd.f32 %v452_v60, %v406_v57  ;;  %v407_v5 = vadd.f32 %v1389_v6, %v392_v61 }
  0xdb   : > { %v453_v7 = vadd.f32 %v1394_v12, %v438_v62  ;;  %475 = vst [vmem:[%s1421_s7 + $0x20] sm:$0xff] %v467_v63 }
  0xdc   : > { %v408_v8 = vadd.f32 %v1389_v6, %v393_v0  ;;  %v454_v9 = vadd.f32 %v1394_v12, %v439_v2  ;;  %v468_v10 = vmax.f32 %v460_v3, 0.0 }
  0xdd   : > { %v461_v1 = vadd.f32 %v453_v7, %v407_v5 }
  0xde   : > { %v462_v11 = vadd.f32 %v454_v9, %v408_v8  ;;  %476 = vst [vmem:[%s1421_s7 + $0x28] sm:$0xff] %v468_v10 }
  0xdf   : > { %v469_v4 = vmax.f32 %v461_v1, 0.0 }
  0xe0   : > { %v470_v6 = vmax.f32 %v462_v11, 0.0 }
  0xe1   : > { %477 = vst [vmem:[%s1421_s7 + $0x30] sm:$0xff] %v469_v4 }
  0xe2   : > { %478 = vst [vmem:[%s1421_s7 + $0x38] sm:$0xff] %v470_v6 }
  0xe3   : > { %979 = shalt.err (!%p976_p12)
}
  0xe4   : > { %s980_s17 = scalar_lea.hbm %s1447_s19, 1024  ;;  %s984_s2 = scalar_lea.hbm %s1499_s6, 2048 }
  0xe5   : > { %p981_p11 = scmp.ne.s32.totalorder %s1447_s19, %s980_s17  ;;  %p985_p7 = scmp.lt.u32.totalorder %s1447_s19, %s1499_s6 }
  0xe6   : > { %p986_p10 = scmp.lt.u32.totalorder %s984_s2, %s980_s17  ;;  %p988_p5 = scmp.lt.u32.totalorder %s980_s17, %s1447_s19 }
  0xe7   : > { %p982_p8 = pnand %p981_p11, %p1254_p1 }
  0xe8   : > { %p987_p13 = por %p986_p10, %p985_p7 }
  0xe9   : > { %p983_p3 = pneg %p982_p8 }
  0xea   : > { %p989_p9 = por %p988_p5, %p987_p13 }
  0xec   : > { %p990_p2 = pnand %p989_p9, %p983_p3 }
  0xee   : > { %993 = shalt.err (!%p990_p2)
}
  0xef   : > { %s1059_s27 = smov 128   ;;  %s1060_s7 = smov 8  }
  0xf0   : > { %718 = dma.vmem_to_hbm [thread:$0]  (%p1254_p1), %s1441_s15, 1024, %s1447_s19, %s480_s0, %s1059_s27, %s1059_s27, %s1060_s7  }
  0xf1 PF: > { %s508_s10 = sand.u32 1, %s1036_s21   ;;  %p1525_p4 = scmp.ne.s32.totalorder %s1507_s28, 0 }
  0xf2   : > { %p1526_p6 = scmp.ge.s32.totalorder %s1048_s24, 2  ;;  %s509_s16 = scalar_lea.sflag [#allocation4], %s508_s10 }
  0xf4   : > { %p741_p0 = pnand %p1526_p6, %p1525_p4 }
  0xf6   : > { %1031 = dma.done.wait (!%p741_p0), %s509_s16, 1024  }
  0xf7   : > { %1033 = vsyncadd (!%p741_p0), %s509_s16, 4294966272  ;;  %p24_p12 = scmp.ge.s32.totalorder %s1244_s18, 4   ;;  %s1527_s21 = smov %s1040_s22 }
  0xf8   : > { %s1528_s22 = smov %s1044_s23  ;;  %s1529_s23 = smov %s1260_s11 }
  0xf9   : > { %s1530_s24 = smov %s1244_s18  ;;  %26 = sbr.rel (!%p24_p12) target bundleno = 13 (0xd), region = 118 }
 0x100   :  { %514 = vsyncpa [#allocation3], 1 }
 0x101   :  { %516 = vsyncpa [#allocation3 + $0x1], 1 }
 0x102   :  { %517 = vsyncpa [#allocation6], 1 }
 0x103   :  { %519 = vsyncpa [#allocation6 + $0x1], 1 }
 0x104   :  { %520 = vsyncpa [#allocation9], 1 }
 0x105   :  { %521 = vsyncpa [#allocation12], 1 }
 0x106   :  { %522 = vsyncpa [#allocation4], 1 }
 0x107   :  { %524 = vsyncpa [#allocation4 + $0x1], 1 }

</bundles_post_ra>
